<compile_context>
chip_gen: v6e
topology: v6e:2x2x1
jax: 0.10.0
libtpu: 0.0.40
codegen_flags: <defaults>
</compile_context>

<pallas_src>
import math
import functools

import jax
import jax.numpy as jnp
from jax import lax
from jax.experimental import pallas as pl
from jax.experimental.pallas import tpu as pltpu


def _transformer_block_kernel(
    x_ref, mk_ref, mq_ref,                    # activations + masks
    vech_ref, bqkv_ref, veco_ref,             # packed f32 vectors
    wqkv_ref, wo_ref, w1_ref, w2_ref,         # bf16 weights
    o_ref,                                    # (TB*S, Ho_pad) output
    attn_ref,                                 # VMEM scratch (TB*S, H) f32
    *, num_heads, head_dim, seq_len, tb, eps,
):
    f32 = jnp.float32
    bf16 = jnp.bfloat16

    x = x_ref[...]                 # (M, H) f32, M = tb * seq_len (residual path)
    mk = mk_ref[...]               # (tb, 1, S) key mask: 1.0 = valid, 0.0 = padding
    mq = mq_ref[...]               # (M, 1)    row mask for final masked_fill

    g1, be1 = vech_ref[0:1], vech_ref[1:2]
    g2, be2 = vech_ref[2:3], vech_ref[3:4]
    bo = vech_ref[4:5]
    b1, b2 = veco_ref[0:1], veco_ref[1:2]

    def layernorm(v, g, b):        # f32 math (v5e has no bf16 VPU/EUP)
        mu = jnp.mean(v, axis=-1, keepdims=True)
        var = jnp.mean((v - mu) * (v - mu), axis=-1, keepdims=True)
        return (v - mu) * lax.rsqrt(var + eps) * g + b

    # norm1 + fused QKV projection (one MXU pass, N = 3H)
    xn = layernorm(x, g1, be1)
    H = x.shape[-1]
    qkv = jnp.dot(xn.astype(bf16), wqkv_ref[...],
                  preferred_element_type=f32) + bqkv_ref[...]
    q = qkv[:, 0:H].astype(bf16)          # scale already folded into Wq / bq
    k = qkv[:, H:2 * H].astype(bf16)
    v = qkv[:, 2 * H:3 * H].astype(bf16)

    # additive key_padding_mask.  Fully-padded sequences give a uniform softmax over
    # padding tokens (finite), which is then zeroed by mq — differs from PyTorch's NaN.
    key_bias = (1.0 - mk) * (-1e30)       # (tb, 1, S)

    # per-sequence, per-head attention; head outputs folded directly into the
    # out-projection accumulator (no concatenate along lanes).
    for t in range(tb):
        r0 = t * seq_len
        kb = key_bias[t]                  # (1, S)
        acc = None
        for h in range(num_heads):
            lo = h * head_dim
            qh = q[r0:r0 + seq_len, lo:lo + head_dim]
            kh = k[r0:r0 + seq_len, lo:lo + head_dim]
            vh = v[r0:r0 + seq_len, lo:lo + head_dim]
            s = lax.dot_general(qh, kh, (((1,), (1,)), ((), ())),
                                preferred_element_type=f32) + kb       # (S, S)
            m = jnp.max(s, axis=-1, keepdims=True)
            p = jnp.exp(s - m)
            p = p * pl.reciprocal(jnp.sum(p, axis=-1, keepdims=True), approx=True)
            o = jnp.dot(p.astype(bf16), vh, preferred_element_type=f32)  # (S, HD)
            part = jnp.dot(o.astype(bf16), wo_ref[h],
                           preferred_element_type=f32)                   # (S, H)
            acc = part if acc is None else acc + part
        attn_ref[r0:r0 + seq_len, :] = acc        # aligned row write into scratch

    # residual + norm2 + linear1/relu + linear2 (all on the full (M, .) slab)
    # TODO(synk): dropout (p=0.1) is identity here (eval-mode); no stochastic path.
    r = x + attn_ref[...] + bo
    rn = layernorm(r, g2, be2)
    h1 = jnp.maximum(
        jnp.dot(rn.astype(bf16), w1_ref[...], preferred_element_type=f32) + b1, 0.0)
    out = jnp.dot(h1.astype(bf16), w2_ref[...], preferred_element_type=f32) + b2

    o_ref[...] = out * mq      # masked_fill(~input_mask.unsqueeze(-1), 0); lane-dense store


def _pick_block(bn, seq_len):
    """Sequences per grid step: aim for ~256 rows (fills MXU M dim on v6e/v7x,
    2x the v5e target) while keeping >= 2 grid steps so v7x's 2 TCs both get work."""
    target = max(1, 256 // seq_len)
    best = 1
    for tb in range(1, bn + 1):
        if bn % tb == 0 and tb <= target and (bn // tb) >= 2:
            best = tb
    return best


def transformer_block_pallas(x, input_mask, params, *, num_heads):
    B, N, S, H = x.shape
    Ho = params["w2"].shape[0]
    BN = B * N
    head_dim = H // num_heads
    Ho_pad = ((Ho + 127) // 128) * 128          # lane-dense output stores

    f32, bf16 = jnp.float32, jnp.bfloat16

    xf = x.reshape(BN * S, H).astype(f32)
    mask_f = input_mask.reshape(BN, S).astype(f32)
    mk3 = mask_f.reshape(BN, 1, S)
    mq2 = mask_f.reshape(BN * S, 1)

    # --- one-time parameter prep (fold scale, fuse QKV, pad Ho, pack vectors) ---
    scale = 1.0 / math.sqrt(head_dim)
    W, b = params["in_proj_w"], params["in_proj_b"]
    w_qkv = jnp.concatenate(
        [W[:H].T * scale, W[H:2 * H].T, W[2 * H:].T], axis=1).astype(bf16)   # (H, 3H)
    b_qkv = jnp.concatenate(
        [b[:H] * scale, b[H:2 * H], b[2 * H:]]).reshape(1, 3 * H).astype(f32)

    wo3 = params["out_proj_w"].T.reshape(num_heads, head_dim, H).astype(bf16)

    w1 = jnp.zeros((H, Ho_pad), f32).at[:, :Ho].set(params["w1"].T).astype(bf16)
    w2 = jnp.zeros((Ho_pad, Ho_pad), f32).at[:Ho, :Ho].set(params["w2"].T).astype(bf16)

    vec_h = jnp.stack([params["g1"], params["be1"], params["g2"], params["be2"],
                       params["out_proj_b"]]).astype(f32)                     # (5, H)
    vec_o = (jnp.zeros((2, Ho_pad), f32)
             .at[0, :Ho].set(params["b1"])
             .at[1, :Ho].set(params["b2"]))                                   # (2, Ho_pad)

    tb = _pick_block(BN, S)
    M = tb * S

    def full_spec(a):
        nd = a.ndim
        return pl.BlockSpec(a.shape, lambda i, _nd=nd: (0,) * _nd)

    in_specs = [
        pl.BlockSpec((M, H), lambda i: (i, 0)),          # x rows for this tile
        pl.BlockSpec((tb, 1, S), lambda i: (i, 0, 0)),   # key mask
        pl.BlockSpec((M, 1), lambda i: (i, 0)),          # query/row mask
        full_spec(vec_h), full_spec(b_qkv), full_spec(vec_o),
        full_spec(w_qkv), full_spec(wo3), full_spec(w1), full_spec(w2),
    ]

    kernel = functools.partial(_transformer_block_kernel, num_heads=num_heads,
                               head_dim=head_dim, seq_len=S, tb=tb, eps=1e-5)

    out = pl.pallas_call(
        kernel,
        out_shape=jax.ShapeDtypeStruct((BN * S, Ho_pad), f32),
        grid=(BN // tb,),
        in_specs=in_specs,
        out_specs=pl.BlockSpec((M, Ho_pad), lambda i: (i, 0)),
        scratch_shapes=[pltpu.VMEM((M, H), f32)],
        compiler_params=pltpu.CompilerParams(
            dimension_semantics=("parallel",),
            vmem_limit_bytes=32 * 1024 * 1024),
    )(xf, mk3, mq2, vec_h, b_qkv, vec_o, w_qkv, wo3, w1, w2)

    return out[:, :Ho].reshape(B, N, S, Ho)


def transformer_block_ref(x, input_mask, params, *, num_heads):
    """Pure-JAX f32 reference mirroring the PyTorch forward (eval mode)."""
    B, N, S, H = x.shape
    Ho = params["w2"].shape[0]
    BN = B * N
    head_dim = H // num_heads
    xf = x.reshape(BN, S, H).astype(jnp.float32)
    mf = input_mask.reshape(BN, S).astype(jnp.float32)

    def ln(v, g, b):
        mu = jnp.mean(v, -1, keepdims=True)
        var = jnp.mean((v - mu) ** 2, -1, keepdims=True)
        return (v - mu) / jnp.sqrt(var + 1e-5) * g + b

    xn = ln(xf, params["g1"], params["be1"])
    W, b = params["in_proj_w"], params["in_proj_b"]
    q = xn @ W[:H].T + b[:H]
    k = xn @ W[H:2 * H].T + b[H:2 * H]
    v = xn @ W[2 * H:].T + b[2 * H:]
    q = q.reshape(BN, S, num_heads, head_dim).transpose(0, 2, 1, 3)
    k = k.reshape(BN, S, num_heads, head_dim).transpose(0, 2, 1, 3)
    v = v.reshape(BN, S, num_heads, head_dim).transpose(0, 2, 1, 3)
    s = jnp.einsum("bhqd,bhkd->bhqk", q, k) / math.sqrt(head_dim)
    s = s + (1.0 - mf)[:, None, None, :] * (-1e30)
    p = jax.nn.softmax(s, axis=-1)
    a = jnp.einsum("bhqk,bhkd->bhqd", p, v).transpose(0, 2, 1, 3).reshape(BN, S, H)
    a = a @ params["out_proj_w"].T + params["out_proj_b"]
    r = xf + a
    rn = ln(r, params["g2"], params["be2"])
    h1 = jax.nn.relu(rn @ params["w1"].T + params["b1"])
    out = h1 @ params["w2"].T + params["b2"]
    out = out * mf[:, :, None]
    return out.reshape(B, N, S, Ho)


def init_params(key, hidden, out_hidden):
    ks = jax.random.split(key, 12)
    n = lambda k, shape, s=0.05: (s * jax.random.normal(k, shape)).astype(jnp.float32)
    return {
        "g1": (1.0 + n(ks[0], (hidden,), 0.1)).astype(jnp.float32),
        "be1": n(ks[1], (hidden,), 0.1),
        "g2": (1.0 + n(ks[2], (hidden,), 0.1)).astype(jnp.float32),
        "be2": n(ks[3], (hidden,), 0.1),
        "in_proj_w": n(ks[4], (3 * hidden, hidden)),
        "in_proj_b": n(ks[5], (3 * hidden,)),
        "out_proj_w": n(ks[6], (hidden, hidden)),
        "out_proj_b": n(ks[7], (hidden,)),
        "w1": n(ks[8], (out_hidden, hidden)),
        "b1": n(ks[9], (out_hidden,)),
        "w2": n(ks[10], (out_hidden, out_hidden)),
        "b2": n(ks[11], (out_hidden,)),
    }


if __name__ == "__main__":
    B, N, S, H, Ho, num_heads = 2, 2, 8, 32, 32, 4
    key = jax.random.PRNGKey(0)
    kx, kp = jax.random.split(key)

    x = jax.random.normal(kx, (B, N, S, H), dtype=jnp.float32)
    lengths = jnp.array([8, 5, 3, 7], dtype=jnp.int32).reshape(B, N)
    input_mask = jnp.arange(S)[None, None, :] < lengths[:, :, None]   # (B, N, S) bool
    params = init_params(kp, H, Ho)

    out = transformer_block_pallas(x, input_mask, params, num_heads=num_heads)
    out = jax.block_until_ready(out)

    ref = transformer_block_ref(x, input_mask, params, num_heads=num_heads)
    assert out.shape == (B, N, S, Ho)
    err = float(jnp.max(jnp.abs(out - ref)))
    assert err < 2e-2, f"max abs error {err}"   # bf16 MXU operands, f32 accumulation
    print("KERNEL_OK")
</pallas_src>

<mosaic_0001>
module attributes {stable_mosaic.version = 11 : i64} {
  func.func @_transformer_block_kernel(%arg0: i32, %arg1: memref<16x32xf32, #tpu.memory_space<vmem>>, %arg2: memref<2x1x8xf32, #tpu.memory_space<vmem>>, %arg3: memref<16x1xf32, #tpu.memory_space<vmem>>, %arg4: memref<5x32xf32, #tpu.memory_space<vmem>>, %arg5: memref<1x96xf32, #tpu.memory_space<vmem>>, %arg6: memref<2x128xf32, #tpu.memory_space<vmem>>, %arg7: memref<32x96xbf16, #tpu.memory_space<vmem>>, %arg8: memref<4x8x32xbf16, #tpu.memory_space<vmem>>, %arg9: memref<32x128xbf16, #tpu.memory_space<vmem>>, %arg10: memref<128x128xbf16, #tpu.memory_space<vmem>>, %arg11: memref<16x128xf32, #tpu.memory_space<vmem>>, %arg12: memref<16x32xf32, #tpu.memory_space<vmem>>) attributes {dimension_semantics = [#tpu.dimension_semantics<parallel>], iteration_bounds = array<i64: 2>, scalar_prefetch = 0 : i64, scratch_operands = 1 : i64, tpu.core_type = #tpu.core_type<tc>, window_params = [{transform_indices = @transform_0, window_bounds = array<i64: 16, 32>}, {transform_indices = @transform_1, window_bounds = array<i64: 2, 1, 8>}, {transform_indices = @transform_2, window_bounds = array<i64: 16, 1>}, {pipeline_mode = #tpu.pipeline_mode<synchronous>, transform_indices = @transform_3, window_bounds = array<i64: 5, 32>}, {pipeline_mode = #tpu.pipeline_mode<synchronous>, transform_indices = @transform_4, window_bounds = array<i64: 1, 96>}, {pipeline_mode = #tpu.pipeline_mode<synchronous>, transform_indices = @transform_5, window_bounds = array<i64: 2, 128>}, {pipeline_mode = #tpu.pipeline_mode<synchronous>, transform_indices = @transform_6, window_bounds = array<i64: 32, 96>}, {pipeline_mode = #tpu.pipeline_mode<synchronous>, transform_indices = @transform_7, window_bounds = array<i64: 4, 8, 32>}, {pipeline_mode = #tpu.pipeline_mode<synchronous>, transform_indices = @transform_8, window_bounds = array<i64: 32, 128>}, {pipeline_mode = #tpu.pipeline_mode<synchronous>, transform_indices = @transform_9, window_bounds = array<i64: 128, 128>}, {transform_indices = @transform_10, window_bounds = array<i64: 16, 128>}]} {
    %c0 = arith.constant 0 : index
    %c0_0 = arith.constant 0 : index
    %0 = vector.load %arg1[%c0, %c0_0] : memref<16x32xf32, #tpu.memory_space<vmem>>, vector<16x32xf32>
    %c0_1 = arith.constant 0 : index
    %c0_2 = arith.constant 0 : index
    %c0_3 = arith.constant 0 : index
    %1 = vector.load %arg2[%c0_1, %c0_2, %c0_3] : memref<2x1x8xf32, #tpu.memory_space<vmem>>, vector<2x1x8xf32>
    %c0_4 = arith.constant 0 : index
    %c0_5 = arith.constant 0 : index
    %2 = vector.load %arg3[%c0_4, %c0_5] : memref<16x1xf32, #tpu.memory_space<vmem>>, vector<16x1xf32>
    %c0_6 = arith.constant 0 : index
    %c0_7 = arith.constant 0 : index
    %3 = vector.load %arg4[%c0_6, %c0_7] : memref<5x32xf32, #tpu.memory_space<vmem>>, vector<1x32xf32>
    %c1 = arith.constant 1 : index
    %c0_8 = arith.constant 0 : index
    %4 = vector.load %arg4[%c1, %c0_8] : memref<5x32xf32, #tpu.memory_space<vmem>>, vector<1x32xf32>
    %c2 = arith.constant 2 : index
    %c0_9 = arith.constant 0 : index
    %5 = vector.load %arg4[%c2, %c0_9] : memref<5x32xf32, #tpu.memory_space<vmem>>, vector<1x32xf32>
    %c3 = arith.constant 3 : index
    %c0_10 = arith.constant 0 : index
    %6 = vector.load %arg4[%c3, %c0_10] : memref<5x32xf32, #tpu.memory_space<vmem>>, vector<1x32xf32>
    %c4 = arith.constant 4 : index
    %c0_11 = arith.constant 0 : index
    %7 = vector.load %arg4[%c4, %c0_11] : memref<5x32xf32, #tpu.memory_space<vmem>>, vector<1x32xf32>
    %c0_12 = arith.constant 0 : index
    %c0_13 = arith.constant 0 : index
    %8 = vector.load %arg6[%c0_12, %c0_13] : memref<2x128xf32, #tpu.memory_space<vmem>>, vector<1x128xf32>
    %c1_14 = arith.constant 1 : index
    %c0_15 = arith.constant 0 : index
    %9 = vector.load %arg6[%c1_14, %c0_15] : memref<2x128xf32, #tpu.memory_space<vmem>>, vector<1x128xf32>
    %cst = arith.constant dense<0.000000e+00> : vector<16xf32>
    %10 = vector.multi_reduction <add>, %0, %cst [1] : vector<16x32xf32> to vector<16xf32>
    %11 = vector.shape_cast %10 : vector<16xf32> to vector<16x1xf32>
    %cst_16 = arith.constant 3.200000e+01 : f32
    %12 = vector.broadcast %cst_16 : f32 to vector<16x1xf32>
    %13 = arith.divf %11, %12 : vector<16x1xf32>
    %14 = vector.broadcast %13 : vector<16x1xf32> to vector<16x32xf32>
    %15 = arith.subf %0, %14 : vector<16x32xf32>
    %16 = vector.broadcast %13 : vector<16x1xf32> to vector<16x32xf32>
    %17 = arith.subf %0, %16 : vector<16x32xf32>
    %18 = arith.mulf %15, %17 : vector<16x32xf32>
    %cst_17 = arith.constant dense<0.000000e+00> : vector<16xf32>
    %19 = vector.multi_reduction <add>, %18, %cst_17 [1] : vector<16x32xf32> to vector<16xf32>
    %20 = vector.shape_cast %19 : vector<16xf32> to vector<16x1xf32>
    %cst_18 = arith.constant 3.200000e+01 : f32
    %21 = vector.broadcast %cst_18 : f32 to vector<16x1xf32>
    %22 = arith.divf %20, %21 : vector<16x1xf32>
    %23 = vector.broadcast %13 : vector<16x1xf32> to vector<16x32xf32>
    %24 = arith.subf %0, %23 : vector<16x32xf32>
    %cst_19 = arith.constant 9.99999974E-6 : f32
    %25 = vector.broadcast %cst_19 : f32 to vector<16x1xf32>
    %26 = arith.addf %22, %25 : vector<16x1xf32>
    %27 = math.rsqrt %26 : vector<16x1xf32>
    %28 = vector.broadcast %27 : vector<16x1xf32> to vector<16x32xf32>
    %29 = arith.mulf %24, %28 : vector<16x32xf32>
    %30 = vector.broadcast %3 : vector<1x32xf32> to vector<16x32xf32>
    %31 = arith.mulf %29, %30 : vector<16x32xf32>
    %32 = vector.broadcast %4 : vector<1x32xf32> to vector<16x32xf32>
    %33 = arith.addf %31, %32 : vector<16x32xf32>
    %34 = arith.truncf %33 : vector<16x32xf32> to vector<16x32xbf16>
    %c0_20 = arith.constant 0 : index
    %c0_21 = arith.constant 0 : index
    %35 = vector.load %arg7[%c0_20, %c0_21] : memref<32x96xbf16, #tpu.memory_space<vmem>>, vector<32x96xbf16>
    %cst_22 = arith.constant dense<0.000000e+00> : vector<16x96xf32>
    %36 = tpu.matmul %34, %35, %cst_22 {dimension_numbers = #tpu.dot_dimension_numbers<[1], [0], [0], [1], [0, 0, 1, 1], [], []>} : vector<16x32xbf16>, vector<32x96xbf16>, vector<16x96xf32> -> vector<16x96xf32>
    %c0_23 = arith.constant 0 : index
    %c0_24 = arith.constant 0 : index
    %37 = vector.load %arg5[%c0_23, %c0_24] : memref<1x96xf32, #tpu.memory_space<vmem>>, vector<1x96xf32>
    %38 = vector.broadcast %37 : vector<1x96xf32> to vector<16x96xf32>
    %39 = arith.addf %36, %38 : vector<16x96xf32>
    %40 = vector.extract_strided_slice %39 {offsets = [0, 0], sizes = [16, 32], strides = [1, 1]} : vector<16x96xf32> to vector<16x32xf32>
    %41 = arith.truncf %40 : vector<16x32xf32> to vector<16x32xbf16>
    %42 = vector.extract_strided_slice %39 {offsets = [0, 32], sizes = [16, 32], strides = [1, 1]} : vector<16x96xf32> to vector<16x32xf32>
    %43 = arith.truncf %42 : vector<16x32xf32> to vector<16x32xbf16>
    %44 = vector.extract_strided_slice %39 {offsets = [0, 64], sizes = [16, 32], strides = [1, 1]} : vector<16x96xf32> to vector<16x32xf32>
    %45 = arith.truncf %44 : vector<16x32xf32> to vector<16x32xbf16>
    %cst_25 = arith.constant 1.000000e+00 : f32
    %46 = vector.broadcast %cst_25 : f32 to vector<2x1x8xf32>
    %47 = arith.subf %46, %1 : vector<2x1x8xf32>
    %cst_26 = arith.constant -1.000000e+30 : f32
    %48 = vector.broadcast %cst_26 : f32 to vector<2x1x8xf32>
    %49 = arith.mulf %47, %48 : vector<2x1x8xf32>
    %50 = vector.extract_strided_slice %49 {offsets = [0, 0, 0], sizes = [1, 1, 8], strides = [1, 1, 1]} : vector<2x1x8xf32> to vector<1x1x8xf32>
    %51 = vector.shape_cast %50 : vector<1x1x8xf32> to vector<1x8xf32>
    %52 = vector.extract_strided_slice %41 {offsets = [0, 0], sizes = [8, 8], strides = [1, 1]} : vector<16x32xbf16> to vector<8x8xbf16>
    %53 = vector.extract_strided_slice %43 {offsets = [0, 0], sizes = [8, 8], strides = [1, 1]} : vector<16x32xbf16> to vector<8x8xbf16>
    %54 = vector.extract_strided_slice %45 {offsets = [0, 0], sizes = [8, 8], strides = [1, 1]} : vector<16x32xbf16> to vector<8x8xbf16>
    %cst_27 = arith.constant dense<0.000000e+00> : vector<8x8xf32>
    %55 = tpu.matmul %52, %53, %cst_27 {dimension_numbers = #tpu.dot_dimension_numbers<[1], [1], [0], [0], [0, 0, 1, 0], [], []>} : vector<8x8xbf16>, vector<8x8xbf16>, vector<8x8xf32> -> vector<8x8xf32>
    %56 = vector.broadcast %51 : vector<1x8xf32> to vector<8x8xf32>
    %57 = arith.addf %55, %56 : vector<8x8xf32>
    %cst_28 = arith.constant dense<0xFF800000> : vector<8xf32>
    %58 = vector.multi_reduction <maximumf>, %57, %cst_28 [1] : vector<8x8xf32> to vector<8xf32>
    %59 = vector.shape_cast %58 : vector<8xf32> to vector<8x1xf32>
    %60 = vector.broadcast %59 : vector<8x1xf32> to vector<8x8xf32>
    %61 = arith.subf %57, %60 : vector<8x8xf32>
    %62 = math.exp %61 : vector<8x8xf32>
    %cst_29 = arith.constant dense<0.000000e+00> : vector<8xf32>
    %63 = vector.multi_reduction <add>, %62, %cst_29 [1] : vector<8x8xf32> to vector<8xf32>
    %64 = vector.shape_cast %63 : vector<8xf32> to vector<8x1xf32>
    %65 = tpu.reciprocal %64 {approx = true} : vector<8x1xf32> -> vector<8x1xf32>
    %66 = vector.broadcast %65 : vector<8x1xf32> to vector<8x8xf32>
    %67 = arith.mulf %62, %66 : vector<8x8xf32>
    %68 = arith.truncf %67 : vector<8x8xf32> to vector<8x8xbf16>
    %cst_30 = arith.constant dense<0.000000e+00> : vector<8x8xf32>
    %69 = tpu.matmul %68, %54, %cst_30 {dimension_numbers = #tpu.dot_dimension_numbers<[1], [0], [0], [1], [0, 0, 1, 1], [], []>} : vector<8x8xbf16>, vector<8x8xbf16>, vector<8x8xf32> -> vector<8x8xf32>
    %70 = arith.truncf %69 : vector<8x8xf32> to vector<8x8xbf16>
    %c0_31 = arith.constant 0 : index
    %c0_32 = arith.constant 0 : index
    %c0_33 = arith.constant 0 : index
    %71 = vector.load %arg8[%c0_31, %c0_32, %c0_33] : memref<4x8x32xbf16, #tpu.memory_space<vmem>>, vector<1x8x32xbf16>
    %72 = vector.shape_cast %71 : vector<1x8x32xbf16> to vector<8x32xbf16>
    %cst_34 = arith.constant dense<0.000000e+00> : vector<8x32xf32>
    %73 = tpu.matmul %70, %72, %cst_34 {dimension_numbers = #tpu.dot_dimension_numbers<[1], [0], [0], [1], [0, 0, 1, 1], [], []>} : vector<8x8xbf16>, vector<8x32xbf16>, vector<8x32xf32> -> vector<8x32xf32>
    %74 = vector.extract_strided_slice %41 {offsets = [0, 8], sizes = [8, 8], strides = [1, 1]} : vector<16x32xbf16> to vector<8x8xbf16>
    %75 = vector.extract_strided_slice %43 {offsets = [0, 8], sizes = [8, 8], strides = [1, 1]} : vector<16x32xbf16> to vector<8x8xbf16>
    %76 = vector.extract_strided_slice %45 {offsets = [0, 8], sizes = [8, 8], strides = [1, 1]} : vector<16x32xbf16> to vector<8x8xbf16>
    %cst_35 = arith.constant dense<0.000000e+00> : vector<8x8xf32>
    %77 = tpu.matmul %74, %75, %cst_35 {dimension_numbers = #tpu.dot_dimension_numbers<[1], [1], [0], [0], [0, 0, 1, 0], [], []>} : vector<8x8xbf16>, vector<8x8xbf16>, vector<8x8xf32> -> vector<8x8xf32>
    %78 = vector.broadcast %51 : vector<1x8xf32> to vector<8x8xf32>
    %79 = arith.addf %77, %78 : vector<8x8xf32>
    %cst_36 = arith.constant dense<0xFF800000> : vector<8xf32>
    %80 = vector.multi_reduction <maximumf>, %79, %cst_36 [1] : vector<8x8xf32> to vector<8xf32>
    %81 = vector.shape_cast %80 : vector<8xf32> to vector<8x1xf32>
    %82 = vector.broadcast %81 : vector<8x1xf32> to vector<8x8xf32>
    %83 = arith.subf %79, %82 : vector<8x8xf32>
    %84 = math.exp %83 : vector<8x8xf32>
    %cst_37 = arith.constant dense<0.000000e+00> : vector<8xf32>
    %85 = vector.multi_reduction <add>, %84, %cst_37 [1] : vector<8x8xf32> to vector<8xf32>
    %86 = vector.shape_cast %85 : vector<8xf32> to vector<8x1xf32>
    %87 = tpu.reciprocal %86 {approx = true} : vector<8x1xf32> -> vector<8x1xf32>
    %88 = vector.broadcast %87 : vector<8x1xf32> to vector<8x8xf32>
    %89 = arith.mulf %84, %88 : vector<8x8xf32>
    %90 = arith.truncf %89 : vector<8x8xf32> to vector<8x8xbf16>
    %cst_38 = arith.constant dense<0.000000e+00> : vector<8x8xf32>
    %91 = tpu.matmul %90, %76, %cst_38 {dimension_numbers = #tpu.dot_dimension_numbers<[1], [0], [0], [1], [0, 0, 1, 1], [], []>} : vector<8x8xbf16>, vector<8x8xbf16>, vector<8x8xf32> -> vector<8x8xf32>
    %92 = arith.truncf %91 : vector<8x8xf32> to vector<8x8xbf16>
    %c1_39 = arith.constant 1 : index
    %c0_40 = arith.constant 0 : index
    %c0_41 = arith.constant 0 : index
    %93 = vector.load %arg8[%c1_39, %c0_40, %c0_41] : memref<4x8x32xbf16, #tpu.memory_space<vmem>>, vector<1x8x32xbf16>
    %94 = vector.shape_cast %93 : vector<1x8x32xbf16> to vector<8x32xbf16>
    %cst_42 = arith.constant dense<0.000000e+00> : vector<8x32xf32>
    %95 = tpu.matmul %92, %94, %cst_42 {dimension_numbers = #tpu.dot_dimension_numbers<[1], [0], [0], [1], [0, 0, 1, 1], [], []>} : vector<8x8xbf16>, vector<8x32xbf16>, vector<8x32xf32> -> vector<8x32xf32>
    %96 = arith.addf %73, %95 : vector<8x32xf32>
    %97 = vector.extract_strided_slice %41 {offsets = [0, 16], sizes = [8, 8], strides = [1, 1]} : vector<16x32xbf16> to vector<8x8xbf16>
    %98 = vector.extract_strided_slice %43 {offsets = [0, 16], sizes = [8, 8], strides = [1, 1]} : vector<16x32xbf16> to vector<8x8xbf16>
    %99 = vector.extract_strided_slice %45 {offsets = [0, 16], sizes = [8, 8], strides = [1, 1]} : vector<16x32xbf16> to vector<8x8xbf16>
    %cst_43 = arith.constant dense<0.000000e+00> : vector<8x8xf32>
    %100 = tpu.matmul %97, %98, %cst_43 {dimension_numbers = #tpu.dot_dimension_numbers<[1], [1], [0], [0], [0, 0, 1, 0], [], []>} : vector<8x8xbf16>, vector<8x8xbf16>, vector<8x8xf32> -> vector<8x8xf32>
    %101 = vector.broadcast %51 : vector<1x8xf32> to vector<8x8xf32>
    %102 = arith.addf %100, %101 : vector<8x8xf32>
    %cst_44 = arith.constant dense<0xFF800000> : vector<8xf32>
    %103 = vector.multi_reduction <maximumf>, %102, %cst_44 [1] : vector<8x8xf32> to vector<8xf32>
    %104 = vector.shape_cast %103 : vector<8xf32> to vector<8x1xf32>
    %105 = vector.broadcast %104 : vector<8x1xf32> to vector<8x8xf32>
    %106 = arith.subf %102, %105 : vector<8x8xf32>
    %107 = math.exp %106 : vector<8x8xf32>
    %cst_45 = arith.constant dense<0.000000e+00> : vector<8xf32>
    %108 = vector.multi_reduction <add>, %107, %cst_45 [1] : vector<8x8xf32> to vector<8xf32>
    %109 = vector.shape_cast %108 : vector<8xf32> to vector<8x1xf32>
    %110 = tpu.reciprocal %109 {approx = true} : vector<8x1xf32> -> vector<8x1xf32>
    %111 = vector.broadcast %110 : vector<8x1xf32> to vector<8x8xf32>
    %112 = arith.mulf %107, %111 : vector<8x8xf32>
    %113 = arith.truncf %112 : vector<8x8xf32> to vector<8x8xbf16>
    %cst_46 = arith.constant dense<0.000000e+00> : vector<8x8xf32>
    %114 = tpu.matmul %113, %99, %cst_46 {dimension_numbers = #tpu.dot_dimension_numbers<[1], [0], [0], [1], [0, 0, 1, 1], [], []>} : vector<8x8xbf16>, vector<8x8xbf16>, vector<8x8xf32> -> vector<8x8xf32>
    %115 = arith.truncf %114 : vector<8x8xf32> to vector<8x8xbf16>
    %c2_47 = arith.constant 2 : index
    %c0_48 = arith.constant 0 : index
    %c0_49 = arith.constant 0 : index
    %116 = vector.load %arg8[%c2_47, %c0_48, %c0_49] : memref<4x8x32xbf16, #tpu.memory_space<vmem>>, vector<1x8x32xbf16>
    %117 = vector.shape_cast %116 : vector<1x8x32xbf16> to vector<8x32xbf16>
    %cst_50 = arith.constant dense<0.000000e+00> : vector<8x32xf32>
    %118 = tpu.matmul %115, %117, %cst_50 {dimension_numbers = #tpu.dot_dimension_numbers<[1], [0], [0], [1], [0, 0, 1, 1], [], []>} : vector<8x8xbf16>, vector<8x32xbf16>, vector<8x32xf32> -> vector<8x32xf32>
    %119 = arith.addf %96, %118 : vector<8x32xf32>
    %120 = vector.extract_strided_slice %41 {offsets = [0, 24], sizes = [8, 8], strides = [1, 1]} : vector<16x32xbf16> to vector<8x8xbf16>
    %121 = vector.extract_strided_slice %43 {offsets = [0, 24], sizes = [8, 8], strides = [1, 1]} : vector<16x32xbf16> to vector<8x8xbf16>
    %122 = vector.extract_strided_slice %45 {offsets = [0, 24], sizes = [8, 8], strides = [1, 1]} : vector<16x32xbf16> to vector<8x8xbf16>
    %cst_51 = arith.constant dense<0.000000e+00> : vector<8x8xf32>
    %123 = tpu.matmul %120, %121, %cst_51 {dimension_numbers = #tpu.dot_dimension_numbers<[1], [1], [0], [0], [0, 0, 1, 0], [], []>} : vector<8x8xbf16>, vector<8x8xbf16>, vector<8x8xf32> -> vector<8x8xf32>
    %124 = vector.broadcast %51 : vector<1x8xf32> to vector<8x8xf32>
    %125 = arith.addf %123, %124 : vector<8x8xf32>
    %cst_52 = arith.constant dense<0xFF800000> : vector<8xf32>
    %126 = vector.multi_reduction <maximumf>, %125, %cst_52 [1] : vector<8x8xf32> to vector<8xf32>
    %127 = vector.shape_cast %126 : vector<8xf32> to vector<8x1xf32>
    %128 = vector.broadcast %127 : vector<8x1xf32> to vector<8x8xf32>
    %129 = arith.subf %125, %128 : vector<8x8xf32>
    %130 = math.exp %129 : vector<8x8xf32>
    %cst_53 = arith.constant dense<0.000000e+00> : vector<8xf32>
    %131 = vector.multi_reduction <add>, %130, %cst_53 [1] : vector<8x8xf32> to vector<8xf32>
    %132 = vector.shape_cast %131 : vector<8xf32> to vector<8x1xf32>
    %133 = tpu.reciprocal %132 {approx = true} : vector<8x1xf32> -> vector<8x1xf32>
    %134 = vector.broadcast %133 : vector<8x1xf32> to vector<8x8xf32>
    %135 = arith.mulf %130, %134 : vector<8x8xf32>
    %136 = arith.truncf %135 : vector<8x8xf32> to vector<8x8xbf16>
    %cst_54 = arith.constant dense<0.000000e+00> : vector<8x8xf32>
    %137 = tpu.matmul %136, %122, %cst_54 {dimension_numbers = #tpu.dot_dimension_numbers<[1], [0], [0], [1], [0, 0, 1, 1], [], []>} : vector<8x8xbf16>, vector<8x8xbf16>, vector<8x8xf32> -> vector<8x8xf32>
    %138 = arith.truncf %137 : vector<8x8xf32> to vector<8x8xbf16>
    %c3_55 = arith.constant 3 : index
    %c0_56 = arith.constant 0 : index
    %c0_57 = arith.constant 0 : index
    %139 = vector.load %arg8[%c3_55, %c0_56, %c0_57] : memref<4x8x32xbf16, #tpu.memory_space<vmem>>, vector<1x8x32xbf16>
    %140 = vector.shape_cast %139 : vector<1x8x32xbf16> to vector<8x32xbf16>
    %cst_58 = arith.constant dense<0.000000e+00> : vector<8x32xf32>
    %141 = tpu.matmul %138, %140, %cst_58 {dimension_numbers = #tpu.dot_dimension_numbers<[1], [0], [0], [1], [0, 0, 1, 1], [], []>} : vector<8x8xbf16>, vector<8x32xbf16>, vector<8x32xf32> -> vector<8x32xf32>
    %142 = arith.addf %119, %141 : vector<8x32xf32>
    %c0_59 = arith.constant 0 : index
    %c0_60 = arith.constant 0 : index
    %143 = vector.load %arg12[%c0_59, %c0_60] : memref<16x32xf32, #tpu.memory_space<vmem>>, vector<8x32xf32>
    tpu.vector_store %arg12[%c0_59, %c0_60], %142 {strides = array<i32>} : memref<16x32xf32, #tpu.memory_space<vmem>>, vector<8x32xf32>,
    %144 = vector.extract_strided_slice %49 {offsets = [1, 0, 0], sizes = [1, 1, 8], strides = [1, 1, 1]} : vector<2x1x8xf32> to vector<1x1x8xf32>
    %145 = vector.shape_cast %144 : vector<1x1x8xf32> to vector<1x8xf32>
    %146 = vector.extract_strided_slice %41 {offsets = [8, 0], sizes = [8, 8], strides = [1, 1]} : vector<16x32xbf16> to vector<8x8xbf16>
    %147 = vector.extract_strided_slice %43 {offsets = [8, 0], sizes = [8, 8], strides = [1, 1]} : vector<16x32xbf16> to vector<8x8xbf16>
    %148 = vector.extract_strided_slice %45 {offsets = [8, 0], sizes = [8, 8], strides = [1, 1]} : vector<16x32xbf16> to vector<8x8xbf16>
    %cst_61 = arith.constant dense<0.000000e+00> : vector<8x8xf32>
    %149 = tpu.matmul %146, %147, %cst_61 {dimension_numbers = #tpu.dot_dimension_numbers<[1], [1], [0], [0], [0, 0, 1, 0], [], []>} : vector<8x8xbf16>, vector<8x8xbf16>, vector<8x8xf32> -> vector<8x8xf32>
    %150 = vector.broadcast %145 : vector<1x8xf32> to vector<8x8xf32>
    %151 = arith.addf %149, %150 : vector<8x8xf32>
    %cst_62 = arith.constant dense<0xFF800000> : vector<8xf32>
    %152 = vector.multi_reduction <maximumf>, %151, %cst_62 [1] : vector<8x8xf32> to vector<8xf32>
    %153 = vector.shape_cast %152 : vector<8xf32> to vector<8x1xf32>
    %154 = vector.broadcast %153 : vector<8x1xf32> to vector<8x8xf32>
    %155 = arith.subf %151, %154 : vector<8x8xf32>
    %156 = math.exp %155 : vector<8x8xf32>
    %cst_63 = arith.constant dense<0.000000e+00> : vector<8xf32>
    %157 = vector.multi_reduction <add>, %156, %cst_63 [1] : vector<8x8xf32> to vector<8xf32>
    %158 = vector.shape_cast %157 : vector<8xf32> to vector<8x1xf32>
    %159 = tpu.reciprocal %158 {approx = true} : vector<8x1xf32> -> vector<8x1xf32>
    %160 = vector.broadcast %159 : vector<8x1xf32> to vector<8x8xf32>
    %161 = arith.mulf %156, %160 : vector<8x8xf32>
    %162 = arith.truncf %161 : vector<8x8xf32> to vector<8x8xbf16>
    %cst_64 = arith.constant dense<0.000000e+00> : vector<8x8xf32>
    %163 = tpu.matmul %162, %148, %cst_64 {dimension_numbers = #tpu.dot_dimension_numbers<[1], [0], [0], [1], [0, 0, 1, 1], [], []>} : vector<8x8xbf16>, vector<8x8xbf16>, vector<8x8xf32> -> vector<8x8xf32>
    %164 = arith.truncf %163 : vector<8x8xf32> to vector<8x8xbf16>
    %c0_65 = arith.constant 0 : index
    %c0_66 = arith.constant 0 : index
    %c0_67 = arith.constant 0 : index
    %165 = vector.load %arg8[%c0_65, %c0_66, %c0_67] : memref<4x8x32xbf16, #tpu.memory_space<vmem>>, vector<1x8x32xbf16>
    %166 = vector.shape_cast %165 : vector<1x8x32xbf16> to vector<8x32xbf16>
    %cst_68 = arith.constant dense<0.000000e+00> : vector<8x32xf32>
    %167 = tpu.matmul %164, %166, %cst_68 {dimension_numbers = #tpu.dot_dimension_numbers<[1], [0], [0], [1], [0, 0, 1, 1], [], []>} : vector<8x8xbf16>, vector<8x32xbf16>, vector<8x32xf32> -> vector<8x32xf32>
    %168 = vector.extract_strided_slice %41 {offsets = [8, 8], sizes = [8, 8], strides = [1, 1]} : vector<16x32xbf16> to vector<8x8xbf16>
    %169 = vector.extract_strided_slice %43 {offsets = [8, 8], sizes = [8, 8], strides = [1, 1]} : vector<16x32xbf16> to vector<8x8xbf16>
    %170 = vector.extract_strided_slice %45 {offsets = [8, 8], sizes = [8, 8], strides = [1, 1]} : vector<16x32xbf16> to vector<8x8xbf16>
    %cst_69 = arith.constant dense<0.000000e+00> : vector<8x8xf32>
    %171 = tpu.matmul %168, %169, %cst_69 {dimension_numbers = #tpu.dot_dimension_numbers<[1], [1], [0], [0], [0, 0, 1, 0], [], []>} : vector<8x8xbf16>, vector<8x8xbf16>, vector<8x8xf32> -> vector<8x8xf32>
    %172 = vector.broadcast %145 : vector<1x8xf32> to vector<8x8xf32>
    %173 = arith.addf %171, %172 : vector<8x8xf32>
    %cst_70 = arith.constant dense<0xFF800000> : vector<8xf32>
    %174 = vector.multi_reduction <maximumf>, %173, %cst_70 [1] : vector<8x8xf32> to vector<8xf32>
    %175 = vector.shape_cast %174 : vector<8xf32> to vector<8x1xf32>
    %176 = vector.broadcast %175 : vector<8x1xf32> to vector<8x8xf32>
    %177 = arith.subf %173, %176 : vector<8x8xf32>
    %178 = math.exp %177 : vector<8x8xf32>
    %cst_71 = arith.constant dense<0.000000e+00> : vector<8xf32>
    %179 = vector.multi_reduction <add>, %178, %cst_71 [1] : vector<8x8xf32> to vector<8xf32>
    %180 = vector.shape_cast %179 : vector<8xf32> to vector<8x1xf32>
    %181 = tpu.reciprocal %180 {approx = true} : vector<8x1xf32> -> vector<8x1xf32>
    %182 = vector.broadcast %181 : vector<8x1xf32> to vector<8x8xf32>
    %183 = arith.mulf %178, %182 : vector<8x8xf32>
    %184 = arith.truncf %183 : vector<8x8xf32> to vector<8x8xbf16>
    %cst_72 = arith.constant dense<0.000000e+00> : vector<8x8xf32>
    %185 = tpu.matmul %184, %170, %cst_72 {dimension_numbers = #tpu.dot_dimension_numbers<[1], [0], [0], [1], [0, 0, 1, 1], [], []>} : vector<8x8xbf16>, vector<8x8xbf16>, vector<8x8xf32> -> vector<8x8xf32>
    %186 = arith.truncf %185 : vector<8x8xf32> to vector<8x8xbf16>
    %c1_73 = arith.constant 1 : index
    %c0_74 = arith.constant 0 : index
    %c0_75 = arith.constant 0 : index
    %187 = vector.load %arg8[%c1_73, %c0_74, %c0_75] : memref<4x8x32xbf16, #tpu.memory_space<vmem>>, vector<1x8x32xbf16>
    %188 = vector.shape_cast %187 : vector<1x8x32xbf16> to vector<8x32xbf16>
    %cst_76 = arith.constant dense<0.000000e+00> : vector<8x32xf32>
    %189 = tpu.matmul %186, %188, %cst_76 {dimension_numbers = #tpu.dot_dimension_numbers<[1], [0], [0], [1], [0, 0, 1, 1], [], []>} : vector<8x8xbf16>, vector<8x32xbf16>, vector<8x32xf32> -> vector<8x32xf32>
    %190 = arith.addf %167, %189 : vector<8x32xf32>
    %191 = vector.extract_strided_slice %41 {offsets = [8, 16], sizes = [8, 8], strides = [1, 1]} : vector<16x32xbf16> to vector<8x8xbf16>
    %192 = vector.extract_strided_slice %43 {offsets = [8, 16], sizes = [8, 8], strides = [1, 1]} : vector<16x32xbf16> to vector<8x8xbf16>
    %193 = vector.extract_strided_slice %45 {offsets = [8, 16], sizes = [8, 8], strides = [1, 1]} : vector<16x32xbf16> to vector<8x8xbf16>
    %cst_77 = arith.constant dense<0.000000e+00> : vector<8x8xf32>
    %194 = tpu.matmul %191, %192, %cst_77 {dimension_numbers = #tpu.dot_dimension_numbers<[1], [1], [0], [0], [0, 0, 1, 0], [], []>} : vector<8x8xbf16>, vector<8x8xbf16>, vector<8x8xf32> -> vector<8x8xf32>
    %195 = vector.broadcast %145 : vector<1x8xf32> to vector<8x8xf32>
    %196 = arith.addf %194, %195 : vector<8x8xf32>
    %cst_78 = arith.constant dense<0xFF800000> : vector<8xf32>
    %197 = vector.multi_reduction <maximumf>, %196, %cst_78 [1] : vector<8x8xf32> to vector<8xf32>
    %198 = vector.shape_cast %197 : vector<8xf32> to vector<8x1xf32>
    %199 = vector.broadcast %198 : vector<8x1xf32> to vector<8x8xf32>
    %200 = arith.subf %196, %199 : vector<8x8xf32>
    %201 = math.exp %200 : vector<8x8xf32>
    %cst_79 = arith.constant dense<0.000000e+00> : vector<8xf32>
    %202 = vector.multi_reduction <add>, %201, %cst_79 [1] : vector<8x8xf32> to vector<8xf32>
    %203 = vector.shape_cast %202 : vector<8xf32> to vector<8x1xf32>
    %204 = tpu.reciprocal %203 {approx = true} : vector<8x1xf32> -> vector<8x1xf32>
    %205 = vector.broadcast %204 : vector<8x1xf32> to vector<8x8xf32>
    %206 = arith.mulf %201, %205 : vector<8x8xf32>
    %207 = arith.truncf %206 : vector<8x8xf32> to vector<8x8xbf16>
    %cst_80 = arith.constant dense<0.000000e+00> : vector<8x8xf32>
    %208 = tpu.matmul %207, %193, %cst_80 {dimension_numbers = #tpu.dot_dimension_numbers<[1], [0], [0], [1], [0, 0, 1, 1], [], []>} : vector<8x8xbf16>, vector<8x8xbf16>, vector<8x8xf32> -> vector<8x8xf32>
    %209 = arith.truncf %208 : vector<8x8xf32> to vector<8x8xbf16>
    %c2_81 = arith.constant 2 : index
    %c0_82 = arith.constant 0 : index
    %c0_83 = arith.constant 0 : index
    %210 = vector.load %arg8[%c2_81, %c0_82, %c0_83] : memref<4x8x32xbf16, #tpu.memory_space<vmem>>, vector<1x8x32xbf16>
    %211 = vector.shape_cast %210 : vector<1x8x32xbf16> to vector<8x32xbf16>
    %cst_84 = arith.constant dense<0.000000e+00> : vector<8x32xf32>
    %212 = tpu.matmul %209, %211, %cst_84 {dimension_numbers = #tpu.dot_dimension_numbers<[1], [0], [0], [1], [0, 0, 1, 1], [], []>} : vector<8x8xbf16>, vector<8x32xbf16>, vector<8x32xf32> -> vector<8x32xf32>
    %213 = arith.addf %190, %212 : vector<8x32xf32>
    %214 = vector.extract_strided_slice %41 {offsets = [8, 24], sizes = [8, 8], strides = [1, 1]} : vector<16x32xbf16> to vector<8x8xbf16>
    %215 = vector.extract_strided_slice %43 {offsets = [8, 24], sizes = [8, 8], strides = [1, 1]} : vector<16x32xbf16> to vector<8x8xbf16>
    %216 = vector.extract_strided_slice %45 {offsets = [8, 24], sizes = [8, 8], strides = [1, 1]} : vector<16x32xbf16> to vector<8x8xbf16>
    %cst_85 = arith.constant dense<0.000000e+00> : vector<8x8xf32>
    %217 = tpu.matmul %214, %215, %cst_85 {dimension_numbers = #tpu.dot_dimension_numbers<[1], [1], [0], [0], [0, 0, 1, 0], [], []>} : vector<8x8xbf16>, vector<8x8xbf16>, vector<8x8xf32> -> vector<8x8xf32>
    %218 = vector.broadcast %145 : vector<1x8xf32> to vector<8x8xf32>
    %219 = arith.addf %217, %218 : vector<8x8xf32>
    %cst_86 = arith.constant dense<0xFF800000> : vector<8xf32>
    %220 = vector.multi_reduction <maximumf>, %219, %cst_86 [1] : vector<8x8xf32> to vector<8xf32>
    %221 = vector.shape_cast %220 : vector<8xf32> to vector<8x1xf32>
    %222 = vector.broadcast %221 : vector<8x1xf32> to vector<8x8xf32>
    %223 = arith.subf %219, %222 : vector<8x8xf32>
    %224 = math.exp %223 : vector<8x8xf32>
    %cst_87 = arith.constant dense<0.000000e+00> : vector<8xf32>
    %225 = vector.multi_reduction <add>, %224, %cst_87 [1] : vector<8x8xf32> to vector<8xf32>
    %226 = vector.shape_cast %225 : vector<8xf32> to vector<8x1xf32>
    %227 = tpu.reciprocal %226 {approx = true} : vector<8x1xf32> -> vector<8x1xf32>
    %228 = vector.broadcast %227 : vector<8x1xf32> to vector<8x8xf32>
    %229 = arith.mulf %224, %228 : vector<8x8xf32>
    %230 = arith.truncf %229 : vector<8x8xf32> to vector<8x8xbf16>
    %cst_88 = arith.constant dense<0.000000e+00> : vector<8x8xf32>
    %231 = tpu.matmul %230, %216, %cst_88 {dimension_numbers = #tpu.dot_dimension_numbers<[1], [0], [0], [1], [0, 0, 1, 1], [], []>} : vector<8x8xbf16>, vector<8x8xbf16>, vector<8x8xf32> -> vector<8x8xf32>
    %232 = arith.truncf %231 : vector<8x8xf32> to vector<8x8xbf16>
    %c3_89 = arith.constant 3 : index
    %c0_90 = arith.constant 0 : index
    %c0_91 = arith.constant 0 : index
    %233 = vector.load %arg8[%c3_89, %c0_90, %c0_91] : memref<4x8x32xbf16, #tpu.memory_space<vmem>>, vector<1x8x32xbf16>
    %234 = vector.shape_cast %233 : vector<1x8x32xbf16> to vector<8x32xbf16>
    %cst_92 = arith.constant dense<0.000000e+00> : vector<8x32xf32>
    %235 = tpu.matmul %232, %234, %cst_92 {dimension_numbers = #tpu.dot_dimension_numbers<[1], [0], [0], [1], [0, 0, 1, 1], [], []>} : vector<8x8xbf16>, vector<8x32xbf16>, vector<8x32xf32> -> vector<8x32xf32>
    %236 = arith.addf %213, %235 : vector<8x32xf32>
    %c8 = arith.constant 8 : index
    %c0_93 = arith.constant 0 : index
    %237 = vector.load %arg12[%c8, %c0_93] : memref<16x32xf32, #tpu.memory_space<vmem>>, vector<8x32xf32>
    tpu.vector_store %arg12[%c8, %c0_93], %236 {strides = array<i32>} : memref<16x32xf32, #tpu.memory_space<vmem>>, vector<8x32xf32>,
    %c0_94 = arith.constant 0 : index
    %c0_95 = arith.constant 0 : index
    %238 = vector.load %arg12[%c0_94, %c0_95] : memref<16x32xf32, #tpu.memory_space<vmem>>, vector<16x32xf32>
    %239 = arith.addf %0, %238 : vector<16x32xf32>
    %240 = vector.broadcast %7 : vector<1x32xf32> to vector<16x32xf32>
    %241 = arith.addf %239, %240 : vector<16x32xf32>
    %cst_96 = arith.constant dense<0.000000e+00> : vector<16xf32>
    %242 = vector.multi_reduction <add>, %241, %cst_96 [1] : vector<16x32xf32> to vector<16xf32>
    %243 = vector.shape_cast %242 : vector<16xf32> to vector<16x1xf32>
    %cst_97 = arith.constant 3.200000e+01 : f32
    %244 = vector.broadcast %cst_97 : f32 to vector<16x1xf32>
    %245 = arith.divf %243, %244 : vector<16x1xf32>
    %246 = vector.broadcast %245 : vector<16x1xf32> to vector<16x32xf32>
    %247 = arith.subf %241, %246 : vector<16x32xf32>
    %248 = vector.broadcast %245 : vector<16x1xf32> to vector<16x32xf32>
    %249 = arith.subf %241, %248 : vector<16x32xf32>
    %250 = arith.mulf %247, %249 : vector<16x32xf32>
    %cst_98 = arith.constant dense<0.000000e+00> : vector<16xf32>
    %251 = vector.multi_reduction <add>, %250, %cst_98 [1] : vector<16x32xf32> to vector<16xf32>
    %252 = vector.shape_cast %251 : vector<16xf32> to vector<16x1xf32>
    %cst_99 = arith.constant 3.200000e+01 : f32
    %253 = vector.broadcast %cst_99 : f32 to vector<16x1xf32>
    %254 = arith.divf %252, %253 : vector<16x1xf32>
    %255 = vector.broadcast %245 : vector<16x1xf32> to vector<16x32xf32>
    %256 = arith.subf %241, %255 : vector<16x32xf32>
    %cst_100 = arith.constant 9.99999974E-6 : f32
    %257 = vector.broadcast %cst_100 : f32 to vector<16x1xf32>
    %258 = arith.addf %254, %257 : vector<16x1xf32>
    %259 = math.rsqrt %258 : vector<16x1xf32>
    %260 = vector.broadcast %259 : vector<16x1xf32> to vector<16x32xf32>
    %261 = arith.mulf %256, %260 : vector<16x32xf32>
    %262 = vector.broadcast %5 : vector<1x32xf32> to vector<16x32xf32>
    %263 = arith.mulf %261, %262 : vector<16x32xf32>
    %264 = vector.broadcast %6 : vector<1x32xf32> to vector<16x32xf32>
    %265 = arith.addf %263, %264 : vector<16x32xf32>
    %266 = arith.truncf %265 : vector<16x32xf32> to vector<16x32xbf16>
    %c0_101 = arith.constant 0 : index
    %c0_102 = arith.constant 0 : index
    %267 = vector.load %arg9[%c0_101, %c0_102] : memref<32x128xbf16, #tpu.memory_space<vmem>>, vector<32x128xbf16>
    %cst_103 = arith.constant dense<0.000000e+00> : vector<16x128xf32>
    %268 = tpu.matmul %266, %267, %cst_103 {dimension_numbers = #tpu.dot_dimension_numbers<[1], [0], [0], [1], [0, 0, 1, 1], [], []>} : vector<16x32xbf16>, vector<32x128xbf16>, vector<16x128xf32> -> vector<16x128xf32>
    %269 = vector.broadcast %8 : vector<1x128xf32> to vector<16x128xf32>
    %270 = arith.addf %268, %269 : vector<16x128xf32>
    %cst_104 = arith.constant 0.000000e+00 : f32
    %271 = vector.broadcast %cst_104 : f32 to vector<16x128xf32>
    %272 = arith.maximumf %270, %271 : vector<16x128xf32>
    %273 = arith.truncf %272 : vector<16x128xf32> to vector<16x128xbf16>
    %c0_105 = arith.constant 0 : index
    %c0_106 = arith.constant 0 : index
    %274 = vector.load %arg10[%c0_105, %c0_106] : memref<128x128xbf16, #tpu.memory_space<vmem>>, vector<128x128xbf16>
    %cst_107 = arith.constant dense<0.000000e+00> : vector<16x128xf32>
    %275 = tpu.matmul %273, %274, %cst_107 {dimension_numbers = #tpu.dot_dimension_numbers<[1], [0], [0], [1], [0, 0, 1, 1], [], []>} : vector<16x128xbf16>, vector<128x128xbf16>, vector<16x128xf32> -> vector<16x128xf32>
    %276 = vector.broadcast %9 : vector<1x128xf32> to vector<16x128xf32>
    %277 = arith.addf %275, %276 : vector<16x128xf32>
    %278 = vector.broadcast %2 : vector<16x1xf32> to vector<16x128xf32>
    %279 = arith.mulf %277, %278 : vector<16x128xf32>
    %c0_108 = arith.constant 0 : index
    %c0_109 = arith.constant 0 : index
    %280 = vector.load %arg11[%c0_108, %c0_109] : memref<16x128xf32, #tpu.memory_space<vmem>>, vector<16x128xf32>
    tpu.vector_store %arg11[%c0_108, %c0_109], %279 {strides = array<i32>} : memref<16x128xf32, #tpu.memory_space<vmem>>, vector<16x128xf32>,
    return
  }
  func.func @transform_0(%arg0: i32) -> (i32, i32) {
    %c0_i32 = arith.constant 0 : i32
    %c0_i32_0 = arith.constant 0 : i32
    return %arg0, %c0_i32 : i32, i32
  }
  func.func @transform_1(%arg0: i32) -> (i32, i32, i32) {
    %c0_i32 = arith.constant 0 : i32
    %c0_i32_0 = arith.constant 0 : i32
    %c0_i32_1 = arith.constant 0 : i32
    return %arg0, %c0_i32, %c0_i32_0 : i32, i32, i32
  }
  func.func @transform_2(%arg0: i32) -> (i32, i32) {
    %c0_i32 = arith.constant 0 : i32
    %c0_i32_0 = arith.constant 0 : i32
    return %arg0, %c0_i32 : i32, i32
  }
  func.func @transform_3(%arg0: i32) -> (i32, i32) {
    %c0_i32 = arith.constant 0 : i32
    %c0_i32_0 = arith.constant 0 : i32
    %c0_i32_1 = arith.constant 0 : i32
    return %c0_i32, %c0_i32_0 : i32, i32
  }
  func.func @transform_4(%arg0: i32) -> (i32, i32) {
    %c0_i32 = arith.constant 0 : i32
    %c0_i32_0 = arith.constant 0 : i32
    %c0_i32_1 = arith.constant 0 : i32
    return %c0_i32, %c0_i32_0 : i32, i32
  }
  func.func @transform_5(%arg0: i32) -> (i32, i32) {
    %c0_i32 = arith.constant 0 : i32
    %c0_i32_0 = arith.constant 0 : i32
    %c0_i32_1 = arith.constant 0 : i32
    return %c0_i32, %c0_i32_0 : i32, i32
  }
  func.func @transform_6(%arg0: i32) -> (i32, i32) {
    %c0_i32 = arith.constant 0 : i32
    %c0_i32_0 = arith.constant 0 : i32
    %c0_i32_1 = arith.constant 0 : i32
    return %c0_i32, %c0_i32_0 : i32, i32
  }
  func.func @transform_7(%arg0: i32) -> (i32, i32, i32) {
    %c0_i32 = arith.constant 0 : i32
    %c0_i32_0 = arith.constant 0 : i32
    %c0_i32_1 = arith.constant 0 : i32
    %c0_i32_2 = arith.constant 0 : i32
    return %c0_i32, %c0_i32_0, %c0_i32_1 : i32, i32, i32
  }
  func.func @transform_8(%arg0: i32) -> (i32, i32) {
    %c0_i32 = arith.constant 0 : i32
    %c0_i32_0 = arith.constant 0 : i32
    %c0_i32_1 = arith.constant 0 : i32
    return %c0_i32, %c0_i32_0 : i32, i32
  }
  func.func @transform_9(%arg0: i32) -> (i32, i32) {
    %c0_i32 = arith.constant 0 : i32
    %c0_i32_0 = arith.constant 0 : i32
    %c0_i32_1 = arith.constant 0 : i32
    return %c0_i32, %c0_i32_0 : i32, i32
  }
  func.func @transform_10(%arg0: i32) -> (i32, i32) {
    %c0_i32 = arith.constant 0 : i32
    %c0_i32_0 = arith.constant 0 : i32
    return %arg0, %c0_i32 : i32, i32
  }
}

</mosaic_0001>

<bundles_post_ra>
// kernel: tpu_custom_call.1
= control target key start
LH: loop header
LB: loop body
LE: loop exit
PB: predicated region body
PF: predicated region fallthrough
CT: control target
= control target key end

     0   :  { %s3643_s0 = inlined_call_operand.vmem [shape: f32[32,32], index: 0, kind: input, shape index: {}]   ;;  %s3644_s1 = inlined_call_operand.hbm [shape: f32[4,1,8], index: 1, kind: input, shape index: {}]   ;;  %s3645_s2 = inlined_call_operand.vmem [shape: f32[32,1], index: 2, kind: input, shape index: {}]   ;;  %s3646_s3 = inlined_call_operand.hbm [shape: f32[5,32], index: 3, kind: input, shape index: {}]   ;;  %s3647_s4 = inlined_call_operand.vmem [shape: f32[1,96], index: 4, kind: input, shape index: {}]   ;;  %s3648_s5 = inlined_call_operand.vmem [shape: f32[2,128], index: 5, kind: input, shape index: {}]   ;;  %s3649_s6 = inlined_call_operand.hbm [shape: bf16[32,96], index: 6, kind: input, shape index: {}]   ;;  %s3650_s7 = inlined_call_operand.hbm [shape: bf16[4,8,32], index: 7, kind: input, shape index: {}]   ;;  %s3651_s8 = inlined_call_operand.hbm [shape: bf16[32,128], index: 8, kind: input, shape index: {}]   ;;  %s3652_s9 = inlined_call_operand.hbm [shape: bf16[128,128], index: 9, kind: input, shape index: {}]   ;;  %s3653_s10 = inlined_call_operand.hbm [shape: f32[32,128], index: 10, kind: output, shape index: {}]  }
   0x1   :  { %3659 = sst [smem:[#allocation20_spill]] %s3646_s3 }
   0x2   :  { %3660 = sst [smem:[#allocation21_spill]] %s3649_s6 }
   0x3   :  { %3661 = sst [smem:[#allocation22_spill]] %s3650_s7 }
   0x4   :  { %3662 = sst [smem:[#allocation23_spill]] %s3651_s8 }
   0x5   :  { %15 = vsyncpa [#allocation4], 0 }
   0x6   :  { %17 = vsyncpa [#allocation4 + $0x1], 0 }
   0x7   :  { %18 = vsyncpa [#allocation7], 0 }
   0x8   :  { %19 = vsyncpa [#allocation10], 0 }
   0x9   :  { %20 = vsyncpa [#allocation13], 0 }
   0xa   :  { %21 = vsyncpa [#allocation5], 0 }
   0xb   :  { %23 = vsyncpa [#allocation5 + $0x1], 0  ;;  %s3114_s13 = smov 0   ;;  %s3116_s14 = smov 0  }
   0xc   :  { %s3118_s15 = smov 0   ;;  %s3120_s16 = smov 0  }
   0xd LB: > { %s3032_s17 = smov [#allocation6]   ;;  %s3135_s19 = sadd.s32 4294967295, %s3030_s16   ;;  %s3030_s16 = sphi %s3120_s16, %s3689_s16   ;;  %s3026_s15 = sphi %s3118_s15, %s3688_s15   ;;  %s3022_s14 = sphi %s3116_s14, %s3687_s14   ;;  %s3018_s13 = sphi %s3114_s13, %s3686_s13  }
   0xe   : > { %s298_s18 = sshll.u32 %s3032_s17, 4  ;;  %p2306_p0 = scmp.ge.s32.totalorder %s3030_s16, 1  ;;  %s299_s18 = int_to_ptr.vmem [resolvable:$true] %s298_s18 }
   0xf   : > { %p3654_p1 = scmp.eq.s32.totalorder %s3135_s19, 0  ;;  %p285_p2 = scmp.lt.s32.totalorder %s3030_s16, 3 }
  0x10   : > { %s3033_s21 = smov [#allocation9]   ;;  %s3034_s24 = smov [#allocation8]  }
  0x11   : > { %p3140_p3 = pnand %p2306_p0, %p285_p2  ;;  %s327_s22 = sshll.u32 %s3033_s21, 4  ;;  %s3153_s22 = int_to_ptr.vmem [resolvable:$true] %s327_s22 }
  0x12   : > { %s314_s25 = sshll.u32 %s3034_s24, 4  ;;  %s2807_s27 = scalar_lea.vmem %s299_s18, 128  ;;  %s3155_s25 = int_to_ptr.vmem [resolvable:$true] %s314_s25 }
  0x13   : > { %s3663_s20 = scalar_select %p3140_p3, 1, 0 }
  0x14   : > { %p2648_p5 = pneg %p3140_p3  ;;  %p2808_p8 = scmp.ne.s32.totalorder %s299_s18, %s2807_s27 }
  0x15   : > { %p2815_p11 = scmp.lt.s32.totalorder %s299_s18, %s299_s18  ;;  %p2816_p12 = scmp.lt.s32.totalorder %s2807_s27, %s2807_s27 }
  0x16   : > { %p3149_p6 = pnand %p2648_p5, %p3654_p1 }
  0x17   : > { %p2817_p13 = por %p2816_p12, %p2815_p11 }
  0x18   : > { %p3159_p7 = pneg %p3149_p6 }
  0x1a   : > { %p2810_p9 = pnand %p2808_p8, %p3159_p7 }
  0x1c   : > { %p2811_p10 = pneg %p2810_p9 }
  0x1e   : > { %p2818_p0 = pnand %p2817_p13, %p2811_p10 }
  0x20   : > { %2821 = shalt.err (!%p2818_p0)
}
  0x21   : > { %s3666_s3 = sld [smem:[#allocation20_spill]]  ;;  %s2833_s30 = scalar_lea.vmem %s3153_s22, 256 }
  0x22   : > { %p2834_p2 = scmp.ne.s32.totalorder %s3153_s22, %s2833_s30  ;;  %p2841_p9 = scmp.lt.s32.totalorder %s3153_s22, %s3153_s22 }
  0x23   : > { %p2842_p11 = scmp.lt.s32.totalorder %s2833_s30, %s2833_s30 }
  0x24   : > { %p2836_p5 = pnand %p2834_p2, %p3159_p7 }
  0x25   : > { %p2843_p10 = por %p2842_p11, %p2841_p9 }
  0x26   : > { %p2837_p8 = pneg %p2836_p5 }
  0x27   : > { %2651 = dma.hbm_to_vmem [thread:$0]  (!%p3149_p6), %s3666_s3, 128, %s299_s18, [#allocation7]  }
  0x28   : > { %p2844_p12 = pnand %p2843_p10, %p2837_p8 }
  0x2a   : > { %2847 = shalt.err (!%p2844_p12)
}
  0x2b   : > { %s3035_s11 = smov 64   ;;  %s3036_s12 = smov 4  }
  0x2c   : > { %s3667_s7 = sld [smem:[#allocation22_spill]]  ;;  %s2859_s21 = scalar_lea.vmem %s3155_s25, 256 }
  0x2d   : > { %p2860_p13 = scmp.ne.s32.totalorder %s3155_s25, %s2859_s21  ;;  %p2867_p5 = scmp.lt.s32.totalorder %s3155_s25, %s3155_s25 }
  0x2e   : > { %p2868_p8 = scmp.lt.s32.totalorder %s2859_s21, %s2859_s21 }
  0x2f   : > { %p2862_p0 = pnand %p2860_p13, %p3159_p7 }
  0x30   : > { %p2869_p9 = por %p2868_p8, %p2867_p5 }
  0x31   : > { %p2863_p2 = pneg %p2862_p0 }
  0x32   : > { %2657 = dma.hbm_to_vmem [thread:$0]  (!%p3149_p6), %s3667_s7, 256, %s3153_s22, [#allocation10], %s3035_s11, %s3035_s11, %s3036_s12  }
  0x33   : > { %p2870_p11 = pnand %p2869_p9, %p2863_p2 }
  0x35   : > { %2873 = shalt.err (!%p2870_p11)
}
  0x36   : > { %s3668_s6 = sld [smem:[#allocation21_spill]]  ;;  %s3037_s22 = smov [#allocation11]  }
  0x37   : > { %s340_s28 = sshll.u32 %s3037_s22, 4  ;;  %s3038_s29 = smov [#allocation12]   ;;  %s341_s28 = int_to_ptr.vmem [resolvable:$true] %s340_s28 }
  0x38   : > { %s353_s30 = sshll.u32 %s3038_s29, 4  ;;  %s2885_s17 = scalar_lea.vmem %s341_s28, 256  ;;  %s354_s30 = int_to_ptr.vmem [resolvable:$true] %s353_s30 }
  0x39   : > { %p2886_p10 = scmp.ne.s32.totalorder %s341_s28, %s2885_s17  ;;  %p2893_p0 = scmp.lt.s32.totalorder %s341_s28, %s341_s28 }
  0x3a   : > { %p2894_p2 = scmp.lt.s32.totalorder %s2885_s17, %s2885_s17 }
  0x3b   : > { %p2888_p12 = pnand %p2886_p10, %p3159_p7 }
  0x3c   : > { %2654 = dma.hbm_to_vmem [thread:$0]  (!%p3149_p6), %s3668_s6, 256, %s3155_s25, [#allocation7], %s3035_s11, %s3035_s11, %s3036_s12  }
  0x3d   : > { %p2889_p13 = pneg %p2888_p12  ;;  %p2895_p5 = por %p2894_p2, %p2893_p0 }
  0x3f   : > { %p2896_p8 = pnand %p2895_p5, %p2889_p13 }
  0x41   : > { %2899 = shalt.err (!%p2896_p8)
}
  0x42   : > { %s3669_s8 = sld [smem:[#allocation23_spill]]  ;;  %s2911_s21 = scalar_lea.vmem %s354_s30, 1024 }
  0x43   : > { %p2912_p9 = scmp.ne.s32.totalorder %s354_s30, %s2911_s21  ;;  %p2919_p12 = scmp.lt.s32.totalorder %s354_s30, %s354_s30 }
  0x44   : > { %p2920_p0 = scmp.lt.s32.totalorder %s2911_s21, %s2911_s21 }
  0x45   : > { %p2914_p11 = pnand %p2912_p9, %p3159_p7 }
  0x46   : > { %p2921_p13 = por %p2920_p0, %p2919_p12 }
  0x47   : > { %p2915_p10 = pneg %p2914_p11 }
  0x48   : > { %2660 = dma.hbm_to_vmem [thread:$0]  (!%p3149_p6), %s3669_s8, 256, %s341_s28, [#allocation10], %s3035_s11, %s3035_s11, %s3036_s12  }
  0x49   : > { %p2922_p2 = pnand %p2921_p13, %p2915_p10 }
  0x4b   : > { %2925 = shalt.err (!%p2922_p2)
}
  0x4c   : > { %2663 = dma.hbm_to_vmem [thread:$0]  (!%p3149_p6), %s3652_s9, 1024, %s354_s30, [#allocation13], %s3035_s11, %s3035_s11, %s3036_s12  }
  0x4d   : > { %s2305_s23 = sadd.s32 4294967294, %s3030_s16   ;;  %s3222_s26 = sadd.s32 1, %s3030_s16  }
  0x4e   : > { %s62_s22 = sadd.s32 1, %s3026_s15  ;;  %s59_s28 = ssub.s32 %s3030_s16, %s3222_s26 }
  0x4f   : > { %p69_p7 = scmp.ne.s32.totalorder %s3026_s15, %s3022_s14  ;;  %p60_p5 = scmp.eq.s32.totalorder %s59_s28, 0 }
  0x50   : > { %p70_p8 = scmp.eq.s32.totalorder %s3030_s16, 0  ;;  %p75_p9 = scmp.ne.s32.totalorder %s3022_s14, %s3018_s13 }
  0x51   : > { %p272_p11 = scmp.eq.s32.totalorder %s3135_s19, 1  ;;  %p278_p0 = scmp.eq.s32.totalorder %s2305_s23, 1 }
  0x52   : > { %s3234_s29 = scalar_select %p60_p5, %s3026_s15, %s62_s22  }
  0x53   : > { %p71_p10 = por %p70_p8, %p69_p7  ;;  %p3238_p12 = por %p3654_p1, %p75_p9 }
  0x54   : > { %p3242_p6 = por %p272_p11, %p69_p7  ;;  %p2677_p13 = scmp.lt.s32.totalorder %s3030_s16, 2 }
  0x55   : > { %s3670_s17 = scalar_select %p3238_p12, 1, 0 }
  0x56   : > { %s3671_s11 = scalar_select %p3242_p6, 1, 0 }
  0x57   : > { %s376_s12 = sand.u32 1, %s3026_s15   ;;  %p3248_p2 = por %p278_p0, %p75_p9 }
  0x58   : > { %s2313_s25 = sshll.u32 %s376_s12, 1  ;;  %s2379_s18 = sshll.u32 %s3030_s16, 5 }
  0x59   : > { %s3672_s30 = scalar_select %p3248_p2, 1, 0 }
  0x5a   : > { %s3256_s27 = scalar_lea.hbm %s3644_s1, %s2379_s18  ;;  %s380_s22 = scalar_lea.vmem [#allocation3], %s2313_s25 }
  0x5b   : > { %s387_s28 = sshll.u32 %s380_s22, 4  ;;  %p3258_p7 = pnand %p2677_p13, %p71_p10  ;;  %s3262_s28 = int_to_ptr.vmem [resolvable:$true] %s387_s28 }
  0x5c   : > { %s3264_s3 = scalar_lea.sflag [#allocation4], %s376_s12  ;;  %s2926_s6 = scalar_lea.hbm %s3256_s27, 32 }
  0x5d   : > { %p2927_p5 = scmp.ne.s32.totalorder %s3256_s27, %s2926_s6  ;;  %p2928_p8 = pneg %p3258_p7 }
  0x5e   : > { %s2931_s25 = scalar_lea.hbm %s3644_s1, 64  ;;  %p2932_p10 = scmp.lt.s32.totalorder %s3256_s27, %s3644_s1 }
  0x5f   : > { %p2929_p9 = pnand %p2928_p8, %p2927_p5  ;;  %p2933_p0 = scmp.lt.s32.totalorder %s2931_s25, %s2926_s6 }
  0x61   : > { %p2930_p11 = pneg %p2929_p9  ;;  %p2934_p13 = por %p2933_p0, %p2932_p10 }
  0x63   : > { %p2935_p4 = pnand %p2934_p13, %p2930_p11 }
  0x65   : > { %2938 = shalt.err (!%p2935_p4)
}
  0x66   : > { %s2939_s12 = scalar_lea.vmem %s3262_s28, 32  ;;  %s3039_s7 = smov [#allocation3]  }
  0x67   : > { %p2940_p1 = scmp.ne.s32.totalorder %s3262_s28, %s2939_s12  ;;  %s2944_s8 = sshll.u32 %s3039_s7, 4  ;;  %s2945_s8 = int_to_ptr.vmem [resolvable:$false] %s2944_s8 }
  0x68   : > { %s2946_s18 = scalar_lea.vmem %s2945_s8, 64  ;;  %p2947_p9 = scmp.lt.s32.totalorder %s3262_s28, %s2945_s8 }
  0x69   : > { %p2942_p2 = pnand %p2940_p1, %p2928_p8  ;;  %p2948_p6 = scmp.lt.s32.totalorder %s2946_s18, %s2939_s12 }
  0x6b   : > { %p2943_p5 = pneg %p2942_p2  ;;  %p2949_p12 = por %p2948_p6, %p2947_p9 }
  0x6d   : > { %p2950_p3 = pnand %p2949_p12, %p2943_p5 }
  0x6f   : > { %2953 = shalt.err (!%p2950_p3)
}
  0x70   : > { %s3040_s6 = smov 16   ;;  %s3041_s21 = smov 1  }
  0x71   : > { %2667 = dma.hbm_to_vmem [thread:$0]  (!%p3258_p7), %s3256_s27, 32, %s3262_s28, %s3264_s3, %s3040_s6, %s3040_s6, %s3041_s21  }
  0x72   : > { %p3674_p1 = scmp.ne.s32.totalorder %s3663_s20, 0 }
  0x73   : > { %s3288_s7 = sand.u32 (!%p3674_p1), 1, %s3022_s14   ;;  %p3675_p3 = scmp.ne.s32.totalorder (!%p3674_p1), %s3670_s17, 0 }
  0x74   : > { %408 = sbr.rel (%p3674_p1) target bundleno = 5916 (0x171c), region = 60  ;;  %s2317_s8 = sshll.u32 (!%p3674_p1), %s3288_s7, 1 }
  0x75   : > { %s411_s25 = scalar_lea.sflag (!%p3674_p1), [#allocation4], %s3288_s7  ;;  %s3292_s24 = scalar_lea.vmem (!%p3674_p1), [#allocation3], %s2317_s8 }
  0x79   : > { %2997 = dma.done.wait (%p3675_p3), %s411_s25, 32  }
  0x7a   : > { %2999 = vsyncadd (%p3675_p3), %s411_s25, 4294967264  ;;  %p3676_p4 = scmp.eq.s32.totalorder %s3135_s19, 0 }
  0x7c   : > { %3001 = dma.done.wait (%p3676_p4), [#allocation7], 384   ;;  %p3677_p12 = pmov %p3676_p4 }
  0x7d   : > { %p3678_p6 = pmov %p3676_p4 }
  0x7e   : > { %3003 = vsyncadd (%p3677_p12), [#allocation7], 4294966912 }
  0x7f   : > { %3005 = dma.done.wait (%p3678_p6), [#allocation10], 512   ;;  %p3679_p2 = pmov %p3676_p4 }
  0x81   : > { %3007 = vsyncadd (%p3679_p2), [#allocation10], 4294966784  ;;  %p3680_p7 = pmov %p3679_p2 }
  0x82   : > { %p3681_p8 = pmov %p3679_p2 }
  0x83   : > { %3009 = dma.done.wait (%p3680_p7), [#allocation13], 1024  }
  0x84   : > { %3011 = vsyncadd (%p3681_p8), [#allocation13], 4294966272  ;;  %s2324_s3 = sshll.u32 %s3135_s19, 1  ;;  %vm509_vm0 = vcmask 261120   ;;  %v2743_v14 = vld [vmem:[#allocation8 + $0x8] sm:$0xff]   ;;  %v3042_v15 = vmov 0.0   ;;  %v623_v44 = vlaneseq }
  0x85   : > { %p482_p11 = scmp.lt.s32.totalorder %s2324_s3, 3  ;;  %2444 = vmatprep.subr.bf16.mxu1 %v3042_v15  ;;  %vm3043_vm1 = vmmov 0   ;;  %v2744_v16 = vld [vmem:[#allocation8] sm:$0xff]   ;;  %2470 = vmatprep.subr.bf16.mxu0 %v3042_v15  ;;  %v2328_v25 = vld [vmem:[#allocation6] ss:$0 sm:$0xff]  ;;  %s3044_s12 = smov 96  }
  0x86   : > { %2448 = vmatprep.mubr.msk.bf16.mxu1 %vm3043_vm1, %v3042_v15  ;;  %2445 = vmatpush3.bf16.msra.mxu1 %v2743_v14  ;;  %v2329_v29 = vld [vmem:[#allocation6 + $0x1] ss:$0 sm:$0xff]  ;;  %v2330_v35 = vld [vmem:[%s3647_s4] ss:$0 sm:$0xff]  ;;  %s3045_s18 = smov 88   ;;  %vm631_vm2 = vcmask 64512  }
  0x87   : > { %s3691_s3 = smov (!%p482_p11, %s2324_s3), 3  ;;  %2446 = vmatprep.subr.bf16.mxu1 %v3042_v15  ;;  %2472 = vmatprep.mubr.msk.bf16.mxu0 %vm3043_vm1, %v3042_v15  ;;  %v498_v45 = vld [vmem:[%s3292_s24] sm:$0x1]  ;;  %v3358_v47 = vshrl.u32 %v623_v44, 7  ;;  %s3046_s6 = smov 64   ;;  %vm695_vm3 = vcmask 1043456  }
  0x88   : > { %s3658_s20 = sshll.u32 %s3691_s3, 3  ;;  %v618_v46 = vsub.f32 1.0, %v498_v45  ;;  %s3047_s21 = smov 120  }
  0x89   : > { %s3319_s28 = scalar_lea.vmem %s3643_s0, %s3658_s20  ;;  %v625_v49 = vsub.s32 0, %v3358_v47  ;;  %s3048_s8 = smov 56  }
  0x8a   : > { %v3322_v0 = vld [vmem:[%s3319_s28] sm:$0xff]  ;;  %v497_v1 = vld [vmem:[%s3319_s28 + $0x8] sm:$0xff]  ;;  %2447 = vmatpush3.bf16.msra.mxu1 %v2744_v16  ;;  %v620_v48 = vmul.f32 -1e+30, %v618_v46  ;;  %s3049_s25 = smov 112   ;;  %s3050_s17 = smov 80  }
  0x8b   : > { %v510_v2 = vsel %vm509_vm0, %v3322_v0, 0.0  ;;  %v513_v3 = vsel %vm509_vm0, %v497_v1, 0.0  ;;  %2452 = vmatprep.subr.bf16.mxu1 %v3042_v15  ;;  %s3051_s27 = smov 72   ;;  %s3052_s23 = smov 104  }
  0x8c   : > { %511 = vadd.xlane.f32.xlu0 %v510_v2  ;;  %v3363_v50 = vrot.slane %v620_v48, %v625_v49  ;;  %s3053_s22 = smov 48   ;;  %s3054_s20 = smov 40  }
  0x8d   : > { %p3683_p0 = scmp.ne.s32.totalorder %s3671_s11, 0 }
  0x90   : > { %514 = vadd.xlane.f32.xlu0 %v513_v3 }
 0x115   : > { %v512_v4 = vpop.xlane.xlu0 %511 }
 0x116   : > { %v517_v5 = vmul.f32 0.03125, %v512_v4 }
 0x118   : > { %v519_v6 = vsub.f32 %v3322_v0, %v517_v5 }
 0x119   : > { %v515_v7 = vpop.xlane.xlu0 %514 }
 0x11a   : > { %v518_v8 = vmul.f32 0.03125, %v515_v7  ;;  %v521_v9 = vmul.f32 %v519_v6, %v519_v6 }
 0x11c   : > { %v520_v10 = vsub.f32 %v497_v1, %v518_v8  ;;  %v523_v11 = vsel %vm509_vm0, %v521_v9, 0.0 }
 0x11d   : > { %524 = vadd.xlane.f32.xlu1 %v523_v11 }
 0x11e   : > { %v522_v12 = vmul.f32 %v520_v10, %v520_v10 }
 0x120   : > { %v526_v13 = vsel %vm509_vm0, %v522_v12, 0.0 }
 0x121   : > { %527 = vadd.xlane.f32.xlu1 %v526_v13 }
 0x1a6   : > { %v525_v17 = vpop.xlane.xlu1 %524 }
 0x1a7   : > { %v529_v18 = vmul.f32 0.03125, %v525_v17 }
 0x1a9   : > { %v531_v19 = vadd.f32 1e-05, %v529_v18 }
 0x1aa   : > { %v528_v20 = vpop.xlane.xlu1 %527 }
 0x1ab   : > { %2755 = vrsqrt.f32 %v531_v19  ;;  %v530_v21 = vmul.f32 0.03125, %v528_v20 }
 0x1ad   : > { %v532_v22 = vadd.f32 1e-05, %v530_v21 }
 0x1af   : > { %2757 = vrsqrt.f32 %v532_v22 }
 0x1b8   : > { %v2756_v23 = vpop.eup %2755 }
 0x1b9   : > { %v535_v24 = vmul.f32 %v2756_v23, %v519_v6 }
 0x1bb   : > { %v541_v28 = vmul.f32 %v2328_v25, %v535_v24 }
 0x1bc   : > { %v2758_v26 = vpop.eup %2757 }
 0x1bd   : > { %v536_v27 = vmul.f32 %v2758_v26, %v520_v10  ;;  %v547_v31 = vadd.f32 %v2329_v29, %v541_v28  ;;  %v853_v26 = vld [vmem:[#allocation9 + $0x4] sm:$0xf] }
 0x1bf   : > { %v542_v30 = vmul.f32 %v2328_v25, %v536_v27  ;;  %v858_v27 = vsel %vm695_vm3, %v853_v26, 0 }
 0x1c1   : > { %v548_v32 = vadd.f32 %v2329_v29, %v542_v30  ;;  %v740_v30 = vld [vmem:[#allocation9] sm:$0xf] }
 0x1c3   : > { %v549_v33 = vpack.c.bf16 %v548_v32, %v547_v31 }
 0x1c5   : > { %2449 = vmatmul.mubr.msk.bf16.vlgmr.msra.gmra.mxu1 %vm509_vm0, %v549_v33  ;;  %v904_v33 = vsel %vm695_vm3, %v740_v30, 0 }
 0x1c6   : > { %2454 = vmatprep.mubr.msk.bf16.mxu1 %vm3043_vm1, %v3042_v15 }
 0x285   : > { %v610_v34 = vpop.f32.mrf.mxu1 }
 0x286   : > { %v611_v38 = vadd.f32 %v2330_v35, %v610_v34 }
 0x287   : > { %v2450_v36 = vpop.f32.mrf.mxu1 }
 0x289   : > { %v613_v37 = vpop.f32.mrf.mxu1 }
 0x28a   : > { %v614_v39 = vadd.f32 %v2330_v35, %v613_v37 }
 0x28b   : > { %v2451_v40 = vpop.f32.mrf.mxu1 }
 0x28c   : > { %v3345_v41 = vpack.c.bf16 %v614_v39, %v611_v38 }
 0x28e   : > { %629 = vrot.lane.b32.xlu0 %v3345_v41, %s3044_s12  ;;  %v3444_v26 = vrot.slane %v3345_v41, 4 }
 0x292   : > { %743 = vrot.lane.b32.xlu0 %v3345_v41, %s3045_s18 }
 0x300   : > { %v630_v42 = vpop.permute.xlu0 %629 }
 0x301   : > { %v636_v43 = vsel %vm631_vm2, %v630_v42, 0 }
 0x302   : > { %2453 = vmatpush3.bf16.xpose.msra.mxu1 %v636_v43 }
 0x303   : > { %2458 = vmatprep.subr.bf16.mxu1 %v3042_v15 }
 0x304   : > { %v744_v4 = vpop.permute.xlu0 %743 }
 0x305   : > { %v749_v6 = vsel %vm631_vm2, %v744_v4, 0 }
 0x309   : > { %2455 = vmatmul.mubr.msk.bf16.vlgmr.msra.gmra.mxu1 %vm631_vm2, %v3345_v41 }
 0x30a   : > { %2460 = vmatprep.mubr.msk.bf16.mxu1 %vm3043_vm1, %v3042_v15 }
 0x3c9   : > { %v672_v51 = vpop.f32.mrf.mxu1 }
 0x3ca   : > { %v673_v52 = vadd.f32 %v672_v51, %v3363_v50 }
 0x3cb   : > { %v2456_v53 = vpop.f32.mrf.mxu1 }
 0x3cc   : > { %v678_v54 = vsel %vm631_vm2, %v673_v52, -inf }
 0x3cd   : > { %679 = vmax.xlane.f32.xlu1 %v678_v54  ;;  %v675_v55 = vpop.f32.mrf.mxu1 }
 0x3cf   : > { %v2457_v56 = vpop.f32.mrf.mxu1 }
 0x456   : > { %v680_v57 = vpop.xlane.xlu1 %679 }
 0x457   : > { %v681_v58 = vsub.f32 %v673_v52, %v680_v57 }
 0x459   : > { %v682_v59 = vmul.f32 1.442695, %v681_v58 }
 0x45b   : > { %2759 = vpow2.f32 %v682_v59 }
 0x468   : > { %v2760_v60 = vpop.eup %2759 }
 0x469   : > { %v684_v61 = vsel %vm631_vm2, %v2760_v60, 0.0 }
 0x46a   : > { %685 = vadd.xlane.f32.xlu1 %v684_v61 }
 0x47b   : > { %690 = vrot.lane.b32.xlu1 %v3345_v41, %s3046_s6 }
 0x47f   : > { %741 = vrot.lane.b32.xlu1 %v3345_v41, %s3047_s21 }
 0x4f3   : > { %v686_v62 = vpop.xlane.xlu1 %685 }
 0x4f4   : > { %2761 = vrcp.f32 %v686_v62 }
 0x4f7   : > { %v691_v63 = vpop.permute.xlu1 %690 }
 0x4f8   : > { %v697_v1 = vsel %vm695_vm3, %v691_v63, 0 }
 0x4f9   : > { %2459 = vmatpush3.bf16.msra.mxu1 %v697_v1 }
 0x4fa   : > { %2464 = vmatprep.subr.bf16.mxu1 %v3042_v15 }
 0x4fb   : > { %v742_v7 = vpop.permute.xlu1 %741 }
 0x501   : > { %v2762_v2 = vpop.eup %2761 }
 0x502   : > { %v688_v3 = vmul.f32 %v2762_v2, %v2760_v60 }
 0x504   : > { %v689_v5 = vpack.c.bf16 %v688_v3, %v688_v3 }
 0x506   : > { %2461 = vmatmul.mubr.msk.bf16.vlgmr.msra.gmra.mxu1 %vm631_vm2, %v689_v5 }
 0x507   : > { %2465 = vmatpush3.bf16.xpose.msra.mxu1 %v749_v6  ;;  %2466 = vmatprep.mubr.msk.bf16.mxu1 %vm3043_vm1, %v3042_v15 }
 0x508   : > { %2476 = vmatprep.subr.bf16.mxu1 %v3042_v15 }
 0x50e   : > { %2467 = vmatmul.mubr.msk.bf16.vlgmr.msra.gmra.mxu1 %vm631_vm2, %v742_v7 }
 0x50f   : > { %2478 = vmatprep.mubr.msk.bf16.mxu1 %vm3043_vm1, %v3042_v15  ;;  %2477 = vmatpush3.bf16.msra.mxu1 %v858_v27 }
 0x510   : > { %2488 = vmatprep.subr.bf16.mxu1 %v3042_v15 }
 0x5c6   : > { %v733_v8 = vpop.f32.mrf.mxu1 }
 0x5c7   : > { %v739_v34 = vpack.c.bf16 %v733_v8, %v733_v8 }
 0x5c8   : > { %v2462_v9 = vpop.f32.mrf.mxu1 }
 0x5ca   : > { %v736_v10 = vpop.f32.mrf.mxu1 }
 0x5cc   : > { %v2463_v11 = vpop.f32.mrf.mxu1 }
 0x5ce   : > { %v785_v12 = vpop.f32.mrf.mxu1 }
 0x5cf   : > { %v786_v13 = vadd.f32 %v785_v12, %v3363_v50  ;;  %v1058_v12 = vld [vmem:[#allocation9 + $0x8] sm:$0xf] }
 0x5d0   : > { %v2468_v14 = vpop.f32.mrf.mxu1 }
 0x5d1   : > { %v791_v16 = vsel %vm631_vm2, %v786_v13, -inf }
 0x5d2   : > { %792 = vmax.xlane.f32.xlu0 %v791_v16  ;;  %v788_v17 = vpop.f32.mrf.mxu1 }
 0x5d4   : > { %v2469_v18 = vpop.f32.mrf.mxu1 }
 0x5e8   : > { %803 = vrot.lane.b32.xlu0 %v3345_v41, %s3048_s8 }
 0x5ec   : > { %946 = vrot.lane.b32.xlu0 %v3345_v41, %s3049_s25 }
 0x65b   : > { %v793_v19 = vpop.xlane.xlu0 %792 }
 0x65c   : > { %v794_v20 = vsub.f32 %v786_v13, %v793_v19  ;;  %v1063_v13 = vsel %vm695_vm3, %v1058_v12, 0 }
 0x65e   : > { %v795_v21 = vmul.f32 1.442695, %v794_v20 }
 0x65f   : > { %v804_v22 = vpop.permute.xlu0 %803 }
 0x660   : > { %2763 = vpow2.f32 %v795_v21  ;;  %v809_v23 = vsel %vm695_vm3, %v804_v22, 0 }
 0x661   : > { %2471 = vmatpush3.bf16.msra.mxu0 %v809_v23 }
 0x662   : > { %2482 = vmatprep.subr.bf16.mxu0 %v3042_v15 }
 0x663   : > { %v947_v44 = vpop.permute.xlu0 %946 }
 0x66d   : > { %v2764_v24 = vpop.eup %2763 }
 0x66e   : > { %v797_v25 = vsel %vm631_vm2, %v2764_v24, 0.0 }
 0x66f   : > { %798 = vadd.xlane.f32.xlu1 %v797_v25 }
 0x680   : > { %948 = vrot.lane.b32.xlu1 %v3345_v41, %s3050_s17 }
 0x6f8   : > { %v799_v28 = vpop.xlane.xlu1 %798 }
 0x6f9   : > { %2765 = vrcp.f32 %v799_v28 }
 0x6fc   : > { %v949_v35 = vpop.permute.xlu1 %948 }
 0x6fd   : > { %v954_v39 = vsel %vm631_vm2, %v949_v35, 0 }
 0x706   : > { %v2766_v29 = vpop.eup %2765 }
 0x707   : > { %v801_v31 = vmul.f32 %v2766_v29, %v2764_v24 }
 0x709   : > { %v802_v32 = vpack.c.bf16 %v801_v31, %v801_v31 }
 0x70b   : > { %2473 = vmatmul.mubr.msk.bf16.vlgmr.msra.gmra.mxu0 %vm631_vm2, %v802_v32 }
 0x70c   : > { %2483 = vmatpush3.bf16.msra.mxu0 %v904_v33  ;;  %2484 = vmatprep.mubr.msk.bf16.mxu0 %vm3043_vm1, %v3042_v15 }
 0x70d   : > { %2494 = vmatprep.subr.bf16.mxu0 %v3042_v15 }
 0x713   : > { %2485 = vmatmul.mubr.msk.bf16.vlgmr.msra.gmra.mxu0 %vm631_vm2, %v739_v34 }
 0x714   : > { %2496 = vmatprep.mubr.msk.bf16.mxu0 %vm3043_vm1, %v3042_v15 }
 0x7cb   : > { %v845_v36 = vpop.f32.mrf.mxu0 }
 0x7cc   : > { %v851_v37 = vpack.c.bf16 %v845_v36, %v845_v36 }
 0x7cd   : > { %v2474_v38 = vpop.f32.mrf.mxu0 }
 0x7ce   : > { %2479 = vmatmul.mubr.msk.bf16.vlgmr.msra.gmra.mxu1 %vm631_vm2, %v851_v37 }
 0x7cf   : > { %2489 = vmatpush3.bf16.xpose.msra.mxu1 %v954_v39  ;;  %v848_v40 = vpop.f32.mrf.mxu0  ;;  %2490 = vmatprep.mubr.msk.bf16.mxu1 %vm3043_vm1, %v3042_v15 }
 0x7d0   : > { %2500 = vmatprep.subr.bf16.mxu1 %v3042_v15 }
 0x7d1   : > { %v2475_v42 = vpop.f32.mrf.mxu0 }
 0x7d3   : > { %v3408_v43 = vpop.f32.mrf.mxu0 }
 0x7d5   : > { %v2486_v45 = vpop.f32.mrf.mxu0 }
 0x7d6   : > { %2491 = vmatmul.mubr.msk.bf16.vlgmr.msra.gmra.mxu1 %vm631_vm2, %v947_v44 }
 0x7d7   : > { %v943_v46 = vpop.f32.mrf.mxu0  ;;  %2502 = vmatprep.mubr.msk.bf16.mxu1 %vm3043_vm1, %v3042_v15  ;;  %2501 = vmatpush3.bf16.msra.mxu1 %v1063_v13 }
 0x7d8   : > { %2512 = vmatprep.subr.bf16.mxu1 %v3042_v15 }
 0x7d9   : > { %v2487_v48 = vpop.f32.mrf.mxu0 }
 0x88e   : > { %v3413_v51 = vpop.f32.mrf.mxu1 }
 0x890   : > { %v2480_v52 = vpop.f32.mrf.mxu1 }
 0x892   : > { %v897_v53 = vpop.f32.mrf.mxu1 }
 0x893   : > { %v499_v53 = vld [vmem:[%s3292_s24 + $0x1] sm:$0x1]  ;;  %s3682_s24 = sshll.u32 %s3691_s3, 3 }
 0x894   : > { %v2481_v54 = vpop.f32.mrf.mxu1 }
 0x895   : > { %v619_v54 = vsub.f32 1.0, %v499_v53 }
 0x896   : > { %v990_v55 = vpop.f32.mrf.mxu1 }
 0x897   : > { %v991_v56 = vadd.f32 %v990_v55, %v3363_v50 }
 0x898   : > { %v2492_v57 = vpop.f32.mrf.mxu1 }
 0x899   : > { %v996_v58 = vsel %vm631_vm2, %v991_v56, -inf  ;;  %v621_v57 = vmul.f32 -1e+30, %v619_v54 }
 0x89a   : > { %997 = vmax.xlane.f32.xlu1 %v996_v58  ;;  %v993_v59 = vpop.f32.mrf.mxu1 }
 0x89c   : > { %v2493_v60 = vpop.f32.mrf.mxu1 }
 0x89d   : > { %v3481_v60 = vrot.slane %v621_v57, %v625_v49 }
 0x8ab   : > { %1108 = vrot.lane.b32.xlu1 %v3345_v41, %s3051_s27 }
 0x8af   : > { %1106 = vrot.lane.b32.xlu1 %v3345_v41, %s3052_s23 }
 0x923   : > { %v998_v61 = vpop.xlane.xlu1 %997 }
 0x924   : > { %v999_v62 = vsub.f32 %v991_v56, %v998_v61 }
 0x926   : > { %v1000_v63 = vmul.f32 1.442695, %v999_v62 }
 0x927   : > { %v1109_v8 = vpop.permute.xlu1 %1108 }
 0x928   : > { %2767 = vpow2.f32 %v1000_v63  ;;  %v1114_v10 = vsel %vm631_vm2, %v1109_v8, 0 }
 0x92b   : > { %v1107_v11 = vpop.permute.xlu1 %1106 }
 0x935   : > { %v2768_v1 = vpop.eup %2767 }
 0x936   : > { %v1002_v2 = vsel %vm631_vm2, %v2768_v1, 0.0 }
 0x937   : > { %1003 = vadd.xlane.f32.xlu0 %v1002_v2 }
 0x94d   : > { %1008 = vrot.lane.b32.xlu0 %v3345_v41, %s3053_s22 }
 0x9c0   : > { %v1004_v3 = vpop.xlane.xlu0 %1003 }
 0x9c1   : > { %2769 = vrcp.f32 %v1004_v3 }
 0x9c4   : > { %v1009_v4 = vpop.permute.xlu0 %1008 }
 0x9c5   : > { %v1014_v5 = vsel %vm695_vm3, %v1009_v4, 0 }
 0x9c6   : > { %2495 = vmatpush3.bf16.msra.mxu0 %v1014_v5 }
 0x9c7   : > { %2506 = vmatprep.subr.bf16.mxu0 %v3042_v15 }
 0x9ce   : > { %v2770_v6 = vpop.eup %2769 }
 0x9cf   : > { %v1006_v7 = vmul.f32 %v2770_v6, %v2768_v1 }
 0x9d1   : > { %v1007_v9 = vpack.c.bf16 %v1006_v7, %v1006_v7 }
 0x9d3   : > { %2497 = vmatmul.mubr.msk.bf16.vlgmr.msra.gmra.mxu0 %vm631_vm2, %v1007_v9 }
 0x9d4   : > { %2507 = vmatpush3.bf16.xpose.msra.mxu0 %v1114_v10  ;;  %2508 = vmatprep.mubr.msk.bf16.mxu0 %vm3043_vm1, %v3042_v15 }
 0x9d5   : > { %2518 = vmatprep.subr.bf16.mxu0 %v3042_v15 }
 0x9db   : > { %2509 = vmatmul.mubr.msk.bf16.vlgmr.msra.gmra.mxu0 %vm631_vm2, %v1107_v11 }
 0x9dc   : > { %2520 = vmatprep.mubr.msk.bf16.mxu0 %vm3043_vm1, %v3042_v15 }
 0xa93   : > { %v1050_v14 = vpop.f32.mrf.mxu0 }
 0xa94   : > { %v1056_v16 = vpack.c.bf16 %v1050_v14, %v1050_v14 }
 0xa95   : > { %v2498_v17 = vpop.f32.mrf.mxu0 }
 0xa96   : > { %2503 = vmatmul.mubr.msk.bf16.vlgmr.msra.gmra.mxu1 %vm631_vm2, %v1056_v16 }
 0xa97   : > { %v1053_v18 = vpop.f32.mrf.mxu0  ;;  %2514 = vmatprep.mubr.msk.bf16.mxu1 %vm3043_vm1, %v3042_v15 }
 0xa99   : > { %v2499_v19 = vpop.f32.mrf.mxu0 }
 0xa9b   : > { %v1150_v20 = vpop.f32.mrf.mxu0 }
 0xa9c   : > { %v1151_v21 = vadd.f32 %v1150_v20, %v3363_v50 }
 0xa9d   : > { %v2510_v22 = vpop.f32.mrf.mxu0 }
 0xa9e   : > { %v1156_v23 = vsel %vm631_vm2, %v1151_v21, -inf }
 0xa9f   : > { %1157 = vmax.xlane.f32.xlu0 %v1156_v23  ;;  %v1153_v24 = vpop.f32.mrf.mxu0 }
 0xaa1   : > { %v2511_v25 = vpop.f32.mrf.mxu0 }
 0xab5   : > { %1168 = vrot.lane.b32.xlu0 %v3345_v41, %s3054_s20  ;;  %v941_v41 = vadd.f32 %v3408_v43, %v3413_v51  ;;  %v1218_v51 = vld [vmem:[#allocation9 + $0xc] sm:$0xf] }
 0xab6   : > { %v1223_v52 = vsel %vm695_vm3, %v1218_v51, 0 }
 0xab7   : > { %2519 = vmatpush3.bf16.msra.mxu0 %v1223_v52 }
 0xab8   : > { %2530 = vmatprep.subr.bf16.mxu0 %v3042_v15 }
 0xab9   : > { %1386 = vrot.lane.b32.xlu0 %v3444_v26, %s3045_s18 }
 0xb28   : > { %v1158_v27 = vpop.xlane.xlu0 %1157 }
 0xb29   : > { %v1159_v28 = vsub.f32 %v1151_v21, %v1158_v27 }
 0xb2b   : > { %v1160_v29 = vmul.f32 1.442695, %v1159_v28 }
 0xb2c   : > { %v1169_v50 = vpop.permute.xlu0 %1168 }
 0xb2d   : > { %2771 = vpow2.f32 %v1160_v29  ;;  %v1174_v30 = vsel %vm695_vm3, %v1169_v50, 0 }
 0xb2e   : > { %2513 = vmatpush3.bf16.msra.mxu1 %v1174_v30 }
 0xb2f   : > { %2524 = vmatprep.subr.bf16.mxu1 %v3042_v15 }
 0xb30   : > { %v1387_v43 = vpop.permute.xlu0 %1386 }
 0xb31   : > { %v1392_v46 = vsel %vm631_vm2, %v1387_v43, 0 }
 0xb3a   : > { %v2772_v31 = vpop.eup %2771 }
 0xb3b   : > { %v1162_v32 = vsel %vm631_vm2, %v2772_v31, 0.0 }
 0xb3c   : > { %1163 = vadd.xlane.f32.xlu1 %v1162_v32 }
 0xb4d   : > { %1274 = vrot.lane.b32.xlu1 %v3444_v26, %s3044_s12  ;;  %s492_s12 = scalar_lea.vmem %s3645_s2, %s3682_s24 }
 0xb51   : > { %1384 = vrot.lane.b32.xlu1 %v3444_v26, %s3047_s21 }
 0xb56   : > { %v1099_v33 = vpop.f32.mrf.mxu1 }
 0xb57   : > { %v3457_v34 = vadd.f32 %v1099_v33, %v941_v41 }
 0xb58   : > { %v2504_v35 = vpop.f32.mrf.mxu1 }
 0xb5a   : > { %v1102_v36 = vpop.f32.mrf.mxu1 }
 0xb5b   : > { %v1383_v36 = vld [vmem:[#allocation9] sm:$0xf] }
 0xb5c   : > { %v2505_v37 = vpop.f32.mrf.mxu1 }
 0xb5d   : > { %v1546_v37 = vsel %vm695_vm3, %v1383_v36, 0 }
 0xbc5   : > { %v1164_v38 = vpop.xlane.xlu1 %1163 }
 0xbc6   : > { %2773 = vrcp.f32 %v1164_v38  ;;  %v1495_v38 = vld [vmem:[#allocation9 + $0x4] sm:$0xf] }
 0xbc9   : > { %v1275_v42 = vpop.permute.xlu1 %1274 }
 0xbca   : > { %v1280_v45 = vsel %vm631_vm2, %v1275_v42, 0 }
 0xbcd   : > { %v1385_v48 = vpop.permute.xlu1 %1384 }
 0xbd3   : > { %v2774_v39 = vpop.eup %2773 }
 0xbd4   : > { %v1166_v40 = vmul.f32 %v2774_v39, %v2772_v31  ;;  %v1500_v39 = vsel %vm695_vm3, %v1495_v38, 0 }
 0xbd6   : > { %v1167_v44 = vpack.c.bf16 %v1166_v40, %v1166_v40 }
 0xbd8   : > { %2515 = vmatmul.mubr.msk.bf16.vlgmr.msra.gmra.mxu1 %vm631_vm2, %v1167_v44 }
 0xbd9   : > { %2525 = vmatpush3.bf16.xpose.msra.mxu1 %v1280_v45  ;;  %2526 = vmatprep.mubr.msk.bf16.mxu1 %vm3043_vm1, %v3042_v15 }
 0xbda   : > { %2536 = vmatprep.subr.bf16.mxu1 %v3042_v15 }
 0xbe0   : > { %2527 = vmatmul.mubr.msk.bf16.vlgmr.msra.gmra.mxu1 %vm631_vm2, %v3444_v26 }
 0xbe1   : > { %2537 = vmatpush3.bf16.xpose.msra.mxu1 %v1392_v46  ;;  %2538 = vmatprep.mubr.msk.bf16.mxu1 %vm3043_vm1, %v3042_v15 }
 0xbe2   : > { %2548 = vmatprep.subr.bf16.mxu1 %v3042_v15 }
 0xbe8   : > { %2539 = vmatmul.mubr.msk.bf16.vlgmr.msra.gmra.mxu1 %vm631_vm2, %v1385_v48 }
 0xbe9   : > { %2550 = vmatprep.mubr.msk.bf16.mxu1 %vm3043_vm1, %v3042_v15  ;;  %2549 = vmatpush3.bf16.msra.mxu1 %v1500_v39 }
 0xbea   : > { %2560 = vmatprep.subr.bf16.mxu1 %v3042_v15 }
 0xc98   : > { %v1210_v55 = vpop.f32.mrf.mxu1 }
 0xc99   : > { %v1216_v56 = vpack.c.bf16 %v1210_v55, %v1210_v55 }
 0xc9a   : > { %v2516_v58 = vpop.f32.mrf.mxu1 }
 0xc9b   : > { %2521 = vmatmul.mubr.msk.bf16.vlgmr.msra.gmra.mxu0 %vm631_vm2, %v1216_v56 }
 0xc9c   : > { %v1213_v59 = vpop.f32.mrf.mxu1  ;;  %2532 = vmatprep.mubr.msk.bf16.mxu0 %vm3043_vm1, %v3042_v15 }
 0xc9e   : > { %v2517_v61 = vpop.f32.mrf.mxu1 }
 0xca0   : > { %v1316_v62 = vpop.f32.mrf.mxu1 }
 0xca1   : > { %v1317_v63 = vadd.f32 %v1316_v62, %v3481_v60 }
 0xca2   : > { %v2528_v1 = vpop.f32.mrf.mxu1 }
 0xca3   : > { %v1322_v2 = vsel %vm631_vm2, %v1317_v63, -inf }
 0xca4   : > { %1323 = vmax.xlane.f32.xlu0 %v1322_v2  ;;  %v1319_v3 = vpop.f32.mrf.mxu1 }
 0xca6   : > { %v2529_v4 = vpop.f32.mrf.mxu1 }
 0xca8   : > { %v1428_v5 = vpop.f32.mrf.mxu1 }
 0xca9   : > { %v1429_v6 = vadd.f32 %v1428_v5, %v3481_v60 }
 0xcaa   : > { %v2540_v7 = vpop.f32.mrf.mxu1 }
 0xcab   : > { %v1434_v8 = vsel %vm631_vm2, %v1429_v6, -inf }
 0xcac   : > { %1435 = vmax.xlane.f32.xlu1 %v1434_v8  ;;  %v1431_v47 = vpop.f32.mrf.mxu1 }
 0xcae   : > { %v2541_v49 = vpop.f32.mrf.mxu1 }
 0xcbd   : > { %1446 = vrot.lane.b32.xlu1 %v3444_v26, %s3048_s8  ;;  %s2323_s8 = sshll.u32 %s3288_s7, 4 }
 0xcc1   : > { %1590 = vrot.lane.b32.xlu1 %v3444_v26, %s3050_s17 }
 0xcc5   : > { %1588 = vrot.lane.b32.xlu1 %v3444_v26, %s3049_s25  ;;  %s480_s25 = scalar_lea.vmem [#allocation14], %s2323_s8 }
 0xcc6   : > { %s2160_s17 = sshll.u32 %s480_s25, 4  ;;  %s3595_s17 = int_to_ptr.vmem [resolvable:$true] %s2160_s17 }
 0xd2d   : > { %v1324_v9 = vpop.xlane.xlu0 %1323 }
 0xd2e   : > { %v1325_v10 = vsub.f32 %v1317_v63, %v1324_v9 }
 0xd30   : > { %v1326_v11 = vmul.f32 1.442695, %v1325_v10 }
 0xd32   : > { %2775 = vpow2.f32 %v1326_v11 }
 0xd35   : > { %v1436_v12 = vpop.xlane.xlu1 %1435 }
 0xd36   : > { %v1437_v13 = vsub.f32 %v1429_v6, %v1436_v12 }
 0xd38   : > { %v1438_v14 = vmul.f32 1.442695, %v1437_v13 }
 0xd39   : > { %v1447_v31 = vpop.permute.xlu1 %1446 }
 0xd3a   : > { %2777 = vpow2.f32 %v1438_v14  ;;  %v1452_v41 = vsel %vm695_vm3, %v1447_v31, 0 }
 0xd3d   : > { %v1591_v46 = vpop.permute.xlu1 %1590 }
 0xd3e   : > { %v1596_v53 = vsel %vm631_vm2, %v1591_v46, 0 }
 0xd3f   : > { %v2776_v16 = vpop.eup %2775 }
 0xd40   : > { %v1328_v17 = vsel %vm631_vm2, %v2776_v16, 0.0 }
 0xd41   : > { %1329 = vadd.xlane.f32.xlu0 %v1328_v17  ;;  %v1589_v56 = vpop.permute.xlu1 %1588 }
 0xd47   : > { %v2778_v18 = vpop.eup %2777 }
 0xd48   : > { %v1440_v19 = vsel %vm631_vm2, %v2778_v18, 0.0 }
 0xd49   : > { %1441 = vadd.xlane.f32.xlu0 %v1440_v19 }
 0xd5b   : > { %v1259_v20 = vpop.f32.mrf.mxu0 }
 0xd5c   : > { %v1265_v21 = vadd.f32 %v1259_v20, %v3457_v34 }
 0xd5d   : > { %v2522_v22 = vpop.f32.mrf.mxu0 }
 0xd5e   : > { %1266 = vst.msk [vmem:[#allocation2] sm:$0xff] %vm509_vm0, %v1265_v21 }
 0xd5f   : > { %v1262_v23 = vpop.f32.mrf.mxu0  ;;  %1334 = vrot.lane.b32.xlu0 %v3444_v26, %s3046_s6 }
 0xd60   : > { %v1699_v23 = vld [vmem:[#allocation9 + $0x8] sm:$0xf] }
 0xd61   : > { %v2523_v24 = vpop.f32.mrf.mxu0 }
 0xd62   : > { %v1704_v24 = vsel %vm695_vm3, %v1699_v23, 0  ;;  %v2747_v23 = vld [vmem:[#allocation12 + $0x38] sm:$0xff]  }
 0xdca   : > { %v1330_v25 = vpop.xlane.xlu0 %1329 }
 0xdcb   : > { %2779 = vrcp.f32 %v1330_v25 }
 0xdd2   : > { %v1442_v27 = vpop.xlane.xlu0 %1441 }
 0xdd3   : > { %2781 = vrcp.f32 %v1442_v27 }
 0xdd6   : > { %v1335_v28 = vpop.permute.xlu0 %1334 }
 0xdd7   : > { %v1340_v29 = vsel %vm695_vm3, %v1335_v28, 0 }
 0xdd8   : > { %v2780_v50 = vpop.eup %2779  ;;  %2531 = vmatpush3.bf16.msra.mxu0 %v1340_v29 }
 0xdd9   : > { %2542 = vmatprep.subr.bf16.mxu0 %v3042_v15  ;;  %v1332_v30 = vmul.f32 %v2780_v50, %v2776_v16  ;;  %v1907_v50 = vld [vmem:[#allocation2] sm:$0xff] }
 0xdda   : > { %v1909_v31 = vadd.f32 %v1907_v50, %v3322_v0 }
 0xddb   : > { %v1333_v32 = vpack.c.bf16 %v1332_v30, %v1332_v30 }
 0xddd   : > { %2533 = vmatmul.mubr.msk.bf16.vlgmr.msra.gmra.mxu0 %vm631_vm2, %v1333_v32 }
 0xdde   : > { %2543 = vmatpush3.bf16.msra.mxu0 %v1452_v41  ;;  %2544 = vmatprep.mubr.msk.bf16.mxu0 %vm3043_vm1, %v3042_v15  ;;  %v2358_v41 = vld [vmem:[#allocation6 + $0x4] ss:$0 sm:$0xff] }
 0xddf   : > { %2554 = vmatprep.subr.bf16.mxu0 %v3042_v15  ;;  %v1915_v36 = vadd.f32 %v2358_v41, %v1909_v31 }
 0xde0   : > { %v2782_v33 = vpop.eup %2781 }
 0xde1   : > { %v1444_v34 = vmul.f32 %v2782_v33, %v2778_v18  ;;  %v1917_v39 = vsel %vm509_vm0, %v1915_v36, 0.0 }
 0xde3   : > { %v1445_v35 = vpack.c.bf16 %v1444_v34, %v1444_v34 }
 0xde5   : > { %2545 = vmatmul.mubr.msk.bf16.vlgmr.msra.gmra.mxu0 %vm631_vm2, %v1445_v35 }
 0xde6   : > { %2556 = vmatprep.mubr.msk.bf16.mxu0 %vm3043_vm1, %v3042_v15  ;;  %2555 = vmatpush3.bf16.msra.mxu0 %v1546_v37 }
 0xde7   : > { %2566 = vmatprep.subr.bf16.mxu0 %v3042_v15 }
 0xe9d   : > { %v1376_v40 = vpop.f32.mrf.mxu0 }
 0xe9e   : > { %v1382_v42 = vpack.c.bf16 %v1376_v40, %v1376_v40 }
 0xe9f   : > { %v2534_v44 = vpop.f32.mrf.mxu0 }
 0xea0   : > { %2557 = vmatmul.mubr.msk.bf16.vlgmr.msra.gmra.mxu0 %vm631_vm2, %v1382_v42 }
 0xea1   : > { %v1379_v45 = vpop.f32.mrf.mxu0  ;;  %2568 = vmatprep.mubr.msk.bf16.mxu0 %vm3043_vm1, %v3042_v15 }
 0xea3   : > { %v2535_v43 = vpop.f32.mrf.mxu0 }
 0xea5   : > { %v1488_v48 = vpop.f32.mrf.mxu0 }
 0xea6   : > { %v1494_v51 = vpack.c.bf16 %v1488_v48, %v1488_v48  ;;  %v1858_v48 = vld [vmem:[#allocation9 + $0xc] sm:$0xf] }
 0xea7   : > { %v2546_v52 = vpop.f32.mrf.mxu0 }
 0xea8   : > { %2551 = vmatmul.mubr.msk.bf16.vlgmr.msra.gmra.mxu1 %vm631_vm2, %v1494_v51  ;;  %v1863_v51 = vsel %vm695_vm3, %v1858_v48, 0  ;;  %v500_v48 = vld [vmem:[%s492_s12] sm:$0xff] }
 0xea9   : > { %2561 = vmatpush3.bf16.xpose.msra.mxu1 %v1596_v53  ;;  %v1491_v54 = vpop.f32.mrf.mxu0  ;;  %2562 = vmatprep.mubr.msk.bf16.mxu1 %vm3043_vm1, %v3042_v15 }
 0xeaa   : > { %2572 = vmatprep.subr.bf16.mxu1 %v3042_v15 }
 0xeab   : > { %v2547_v55 = vpop.f32.mrf.mxu0 }
 0xeb0   : > { %2563 = vmatmul.mubr.msk.bf16.vlgmr.msra.gmra.mxu1 %vm631_vm2, %v1589_v56 }
 0xeb1   : > { %2574 = vmatprep.mubr.msk.bf16.mxu1 %vm3043_vm1, %v3042_v15  ;;  %2573 = vmatpush3.bf16.msra.mxu1 %v1704_v24  ;;  %v2748_v24 = vld [vmem:[#allocation12 + $0x30] sm:$0xff]  }
 0xeb2   : > { %2584 = vmatprep.subr.bf16.mxu1 %v3042_v15 }
 0xf60   : > { %v1582_v57 = vpop.f32.mrf.mxu0 }
 0xf62   : > { %v2558_v58 = vpop.f32.mrf.mxu0 }
 0xf64   : > { %v1585_v59 = vpop.f32.mrf.mxu0 }
 0xf66   : > { %v2559_v61 = vpop.f32.mrf.mxu0 }
 0xf68   : > { %v1536_v62 = vpop.f32.mrf.mxu1 }
 0xf69   : > { %v3524_v63 = vadd.f32 %v1582_v57, %v1536_v62 }
 0xf6a   : > { %v2552_v1 = vpop.f32.mrf.mxu1 }
 0xf6c   : > { %v1539_v2 = vpop.f32.mrf.mxu1 }
 0xf6e   : > { %v2553_v3 = vpop.f32.mrf.mxu1 }
 0xf70   : > { %v1632_v4 = vpop.f32.mrf.mxu1 }
 0xf71   : > { %v1633_v5 = vadd.f32 %v1632_v4, %v3481_v60 }
 0xf72   : > { %v2564_v6 = vpop.f32.mrf.mxu1 }
 0xf73   : > { %v1638_v7 = vsel %vm631_vm2, %v1633_v5, -inf }
 0xf74   : > { %1639 = vmax.xlane.f32.xlu0 %v1638_v7  ;;  %v1635_v8 = vpop.f32.mrf.mxu1 }
 0xf76   : > { %v2565_v47 = vpop.f32.mrf.mxu1 }
 0xf8a   : > { %1650 = vrot.lane.b32.xlu0 %v3444_v26, %s3053_s22 }
 0xf8e   : > { %1747 = vrot.lane.b32.xlu0 %v3444_v26, %s3052_s23 }
 0xffd   : > { %v1640_v49 = vpop.xlane.xlu0 %1639 }
 0xffe   : > { %v1641_v9 = vsub.f32 %v1633_v5, %v1640_v49 }
0x1000   : > { %v1642_v10 = vmul.f32 1.442695, %v1641_v9  ;;  %v2795_v9 = vld [vmem:[%s3319_s28 + $0x8] sm:$0xff]  ;;  %s2954_s28 = scalar_lea.vmem %s3595_s17, 256 }
0x1001   : > { %v1651_v11 = vpop.permute.xlu0 %1650  ;;  %p2955_p10 = scmp.ne.s32.totalorder %s3595_s17, %s2954_s28 }
0x1002   : > { %2783 = vpow2.f32 %v1642_v10  ;;  %v1656_v12 = vsel %vm695_vm3, %v1651_v11, 0 }
0x1003   : > { %2567 = vmatpush3.bf16.msra.mxu0 %v1656_v12  ;;  %p2956_p13 = pnand %p2955_p10, %p3683_p0 }
0x1004   : > { %2578 = vmatprep.subr.bf16.mxu0 %v3042_v15 }
0x1005   : > { %v1748_v22 = vpop.permute.xlu0 %1747  ;;  %p2957_p5 = pneg %p2956_p13 }
0x100f   : > { %v2784_v13 = vpop.eup %2783 }
0x1010   : > { %v1644_v14 = vsel %vm631_vm2, %v2784_v13, 0.0 }
0x1011   : > { %1645 = vadd.xlane.f32.xlu1 %v1644_v14 }
0x1022   : > { %1749 = vrot.lane.b32.xlu1 %v3444_v26, %s3051_s27  ;;  %s2380_s27 = sshll.u32 %s3135_s19, 8  ;;  %s3056_s19 = smov [#allocation14]  }
0x1023   : > { %s3600_s24 = scalar_lea.hbm %s3653_s10, %s2380_s27 }
0x109a   : > { %v1646_v16 = vpop.xlane.xlu1 %1645 }
0x109b   : > { %2785 = vrcp.f32 %v1646_v16 }
0x109e   : > { %v1750_v19 = vpop.permute.xlu1 %1749 }
0x109f   : > { %v1755_v21 = vsel %vm631_vm2, %v1750_v19, 0 }
0x10a8   : > { %v2786_v17 = vpop.eup %2785 }
0x10a9   : > { %v1648_v18 = vmul.f32 %v2786_v17, %v2784_v13 }
0x10ab   : > { %v1649_v20 = vpack.c.bf16 %v1648_v18, %v1648_v18 }
0x10ad   : > { %2569 = vmatmul.mubr.msk.bf16.vlgmr.msra.gmra.mxu0 %vm631_vm2, %v1649_v20 }
0x10ae   : > { %2579 = vmatpush3.bf16.xpose.msra.mxu0 %v1755_v21  ;;  %2580 = vmatprep.mubr.msk.bf16.mxu0 %vm3043_vm1, %v3042_v15  ;;  %v2745_v21 = vld [vmem:[#allocation11 + $0x8] sm:$0xff]  }
0x10af   : > { %2590 = vmatprep.subr.bf16.mxu0 %v3042_v15 }
0x10b5   : > { %2581 = vmatmul.mubr.msk.bf16.vlgmr.msra.gmra.mxu0 %vm631_vm2, %v1748_v22  ;;  %v2746_v22 = vld [vmem:[#allocation11] sm:$0xff]  }
0x10b6   : > { %2592 = vmatprep.mubr.msk.bf16.mxu0 %vm3043_vm1, %v3042_v15  ;;  %2591 = vmatpush3.bf16.msra.mxu0 %v1863_v51  ;;  %v501_v51 = vld [vmem:[%s492_s12 + $0x8] sm:$0xff]  ;;  %s2958_s12 = sshll.u32 %s3056_s19, 4  ;;  %s2959_s12 = int_to_ptr.vmem [resolvable:$false] %s2958_s12 }
0x10b7   : > { %2604 = vmatprep.subr.bf16.mxu0 %v3042_v15  ;;  %s2960_s18 = scalar_lea.vmem %s2959_s12, 512  ;;  %p2961_p9 = scmp.lt.s32.totalorder %s3595_s17, %s2959_s12 }
0x10b8   : > { %p2962_p1 = scmp.lt.s32.totalorder %s2960_s18, %s2954_s28 }
0x10ba   : > { %p2963_p3 = por %p2962_p1, %p2961_p9 }
0x10bc   : > { %p2964_p4 = pnand %p2963_p3, %p2957_p5 }
0x116d   : > { %v1692_v25 = vpop.f32.mrf.mxu0 }
0x116e   : > { %v1698_v27 = vpack.c.bf16 %v1692_v25, %v1692_v25  ;;  %v2749_v25 = vld [vmem:[#allocation12 + $0x28] sm:$0xff]  }
0x116f   : > { %v2570_v28 = vpop.f32.mrf.mxu0 }
0x1170   : > { %2575 = vmatmul.mubr.msk.bf16.vlgmr.msra.gmra.mxu1 %vm631_vm2, %v1698_v27  ;;  %v2750_v27 = vld [vmem:[#allocation12 + $0x20] sm:$0xff]   ;;  %v2751_v28 = vld [vmem:[#allocation12 + $0x18] sm:$0xff]  }
0x1171   : > { %v1695_v29 = vpop.f32.mrf.mxu0  ;;  %2586 = vmatprep.mubr.msk.bf16.mxu1 %vm3043_vm1, %v3042_v15 }
0x1173   : > { %v2571_v30 = vpop.f32.mrf.mxu0 }
0x1175   : > { %v1791_v32 = vpop.f32.mrf.mxu0 }
0x1176   : > { %v1792_v33 = vadd.f32 %v1791_v32, %v3481_v60 }
0x1177   : > { %v2582_v34 = vpop.f32.mrf.mxu0 }
0x1178   : > { %v1797_v35 = vsel %vm631_vm2, %v1792_v33, -inf }
0x1179   : > { %1798 = vmax.xlane.f32.xlu1 %v1797_v35  ;;  %v1794_v37 = vpop.f32.mrf.mxu0  ;;  %v2359_v35 = vld [vmem:[#allocation6 + $0x2] ss:$0 sm:$0xff] }
0x117b   : > { %v2583_v38 = vpop.f32.mrf.mxu0 }
0x117d   : > { %1918 = vadd.xlane.f32.xlu1 %v1917_v39  ;;  %v2360_v39 = vld [vmem:[#allocation6 + $0x3] ss:$0 sm:$0xff] }
0x1202   : > { %v1799_v40 = vpop.xlane.xlu1 %1798 }
0x1203   : > { %v1800_v42 = vsub.f32 %v1792_v33, %v1799_v40 }
0x1205   : > { %v1801_v44 = vmul.f32 1.442695, %v1800_v42 }
0x1206   : > { %v1919_v5 = vpop.xlane.xlu1 %1918 }
0x1207   : > { %2787 = vpow2.f32 %v1801_v44  ;;  %v1923_v8 = vmul.f32 0.03125, %v1919_v5 }
0x1209   : > { %v1925_v49 = vsub.f32 %v1915_v36, %v1923_v8 }
0x120b   : > { %v1927_v13 = vmul.f32 %v1925_v49, %v1925_v49 }
0x120d   : > { %v1929_v14 = vsel %vm509_vm0, %v1927_v13, 0.0 }
0x1214   : > { %v2788_v45 = vpop.eup %2787 }
0x1215   : > { %v1803_v0 = vsel %vm631_vm2, %v2788_v45, 0.0 }
0x1216   : > { %1804 = vadd.xlane.f32.xlu0 %v1803_v0  ;;  %v2752_v0 = vld [vmem:[#allocation12 + $0x10] sm:$0xff]  }
0x122c   : > { %1809 = vrot.lane.b32.xlu0 %v3444_v26, %s3054_s20  ;;  %s2147_s20 = scalar_lea.sflag [#allocation5], %s3288_s7 }
0x1230   : > { %v1740_v60 = vpop.f32.mrf.mxu1 }
0x1231   : > { %v1746_v43 = vadd.f32 %v1740_v60, %v3524_v63  ;;  %v2753_v60 = vld [vmem:[#allocation12 + $0x8] sm:$0xff]  }
0x1232   : > { %v2576_v46 = vpop.f32.mrf.mxu1 }
0x1233   : > { %v3055_v46 = vmov 0  }
0x1234   : > { %v1743_v52 = vpop.f32.mrf.mxu1  ;;  %2741 = vset.pattern.permute.xlu1 %v3055_v46  ;;  %2742 = vset.pattern.permute.xlu0 %v3055_v46 }
0x1235   : > { %2139 = vperm.xlu0 %2742, %v501_v51   ;;  %v2361_v52 = vld [vmem:[%s3648_s5] ss:$0 sm:$0xff] }
0x1236   : > { %v2577_v53 = vpop.f32.mrf.mxu1 }
0x129f   : > { %v1805_v54 = vpop.xlane.xlu0 %1804 }
0x12a0   : > { %2789 = vrcp.f32 %v1805_v54 }
0x12a3   : > { %v1810_v55 = vpop.permute.xlu0 %1809 }
0x12a4   : > { %v1815_v56 = vsel %vm695_vm3, %v1810_v55, 0 }
0x12a5   : > { %2585 = vmatpush3.bf16.msra.mxu1 %v1815_v56 }
0x12a6   : > { %2596 = vmatprep.subr.bf16.mxu1 %v3042_v15 }
0x12ad   : > { %v2790_v26 = vpop.eup %2789 }
0x12ae   : > { %v1807_v57 = vmul.f32 %v2790_v26, %v2788_v45 }
0x12b0   : > { %v1808_v58 = vpack.c.bf16 %v1807_v57, %v1807_v57  ;;  %v2140_v5 = vpop.permute.xlu0 %2139 }
0x12b2   : > { %2587 = vmatmul.mubr.msk.bf16.vlgmr.msra.gmra.mxu1 %vm631_vm2, %v1808_v58 }
0x12b3   : > { %2600 = vmatprep.mubr.msk.bf16.mxu1 %vm3043_vm1, %v3042_v15  ;;  %2597 = vmatpush3.bf16.msra.mxu1 %v2745_v21 }
0x12b4   : > { %2598 = vmatprep.subr.bf16.mxu1 %v3042_v15 }
0x12b7   : > { %2599 = vmatpush3.bf16.msra.mxu1 %v2746_v22 }
0x1372   : > { %v1851_v59 = vpop.f32.mrf.mxu1 }
0x1373   : > { %v1857_v61 = vpack.c.bf16 %v1851_v59, %v1851_v59 }
0x1374   : > { %v2588_v62 = vpop.f32.mrf.mxu1 }
0x1375   : > { %2593 = vmatmul.mubr.msk.bf16.vlgmr.msra.gmra.mxu0 %vm631_vm2, %v1857_v61  ;;  %v2365_v61 = vld [vmem:[%s3648_s5 + $0x1] ss:$0 sm:$0xff] }
0x1376   : > { %v1854_v63 = vpop.f32.mrf.mxu1  ;;  %2620 = vmatprep.mubr.msk.bf16.mxu0 %vm3043_vm1, %v3042_v15  ;;  %2605 = vmatpush3.bf16.msra.mxu0 %v2747_v23 }
0x1377   : > { %2606 = vmatprep.subr.bf16.mxu0 %v3042_v15 }
0x1378   : > { %v2589_v1 = vpop.f32.mrf.mxu1 }
0x137a   : > { %2607 = vmatpush3.bf16.msra.mxu0 %v2748_v24 }
0x137b   : > { %2608 = vmatprep.subr.bf16.mxu0 %v3042_v15 }
0x137e   : > { %2609 = vmatpush3.bf16.msra.mxu0 %v2749_v25 }
0x137f   : > { %2610 = vmatprep.subr.bf16.mxu0 %v3042_v15 }
0x1382   : > { %2611 = vmatpush3.bf16.msra.mxu0 %v2750_v27 }
0x1383   : > { %2612 = vmatprep.subr.bf16.mxu0 %v3042_v15 }
0x1386   : > { %2613 = vmatpush3.bf16.msra.mxu0 %v2751_v28 }
0x1387   : > { %2614 = vmatprep.subr.bf16.mxu0 %v3042_v15 }
0x138a   : > { %2615 = vmatpush3.bf16.msra.mxu0 %v2752_v0 }
0x138b   : > { %2616 = vmatprep.subr.bf16.mxu0 %v3042_v15 }
0x138e   : > { %2617 = vmatpush3.bf16.msra.mxu0 %v2753_v60 }
0x138f   : > { %2618 = vmatprep.subr.bf16.mxu0 %v3042_v15 }
0x1435   : > { %v1899_v2 = vpop.f32.mrf.mxu0 }
0x1436   : > { %v1905_v3 = vadd.f32 %v1899_v2, %v1746_v43  ;;  %v2754_v43 = vld [vmem:[#allocation12] sm:$0xff]  }
0x1437   : > { %v2594_v4 = vpop.f32.mrf.mxu0  ;;  %2619 = vmatpush3.bf16.msra.mxu0 %v2754_v43 }
0x1438   : > { %1906 = vst.msk [vmem:[#allocation2 + $0x8] sm:$0xff] %vm509_vm0, %v1905_v3 }
0x1439   : > { %v1902_v6 = vpop.f32.mrf.mxu0 }
0x143b   : > { %v2595_v7 = vpop.f32.mrf.mxu0 }
0x143f   : > { %v1908_v47 = vld [vmem:[#allocation2 + $0x8] sm:$0xff] }
0x1440   : > { %v1910_v10 = vadd.f32 %v2795_v9, %v1908_v47 }
0x1442   : > { %v1916_v11 = vadd.f32 %v2358_v41, %v1910_v10 }
0x1444   : > { %v1920_v12 = vsel %vm509_vm0, %v1916_v11, 0.0 }
0x1445   : > { %1921 = vadd.xlane.f32.xlu1 %v1920_v12 }
0x1449   : > { %1930 = vadd.xlane.f32.xlu1 %v1929_v14 }
0x14ce   : > { %v1922_v16 = vpop.xlane.xlu1 %1921 }
0x14cf   : > { %v1924_v17 = vmul.f32 0.03125, %v1922_v16 }
0x14d1   : > { %v1926_v18 = vsub.f32 %v1916_v11, %v1924_v17 }
0x14d2   : > { %v1931_v29 = vpop.xlane.xlu1 %1930 }
0x14d3   : > { %v1928_v19 = vmul.f32 %v1926_v18, %v1926_v18  ;;  %v1935_v50 = vmul.f32 0.03125, %v1931_v29 }
0x14d5   : > { %v1932_v20 = vsel %vm509_vm0, %v1928_v19, 0.0  ;;  %v1937_v30 = vadd.f32 1e-05, %v1935_v50 }
0x14d6   : > { %1933 = vadd.xlane.f32.xlu1 %v1932_v20 }
0x14d7   : > { %2791 = vrsqrt.f32 %v1937_v30 }
0x14e4   : > { %v2792_v33 = vpop.eup %2791 }
0x14e5   : > { %v1941_v34 = vmul.f32 %v2792_v33, %v1925_v49 }
0x14e7   : > { %v1947_v38 = vmul.f32 %v2359_v35, %v1941_v34  ;;  %2134 = vperm.xlu1 %2741, %v500_v48  }
0x14e9   : > { %v1953_v42 = vadd.f32 %v2360_v39, %v1947_v38 }
0x155f   : > { %v1934_v31 = vpop.xlane.xlu1 %1933 }
0x1560   : > { %v1936_v32 = vmul.f32 0.03125, %v1934_v31 }
0x1562   : > { %v1938_v41 = vadd.f32 1e-05, %v1936_v32 }
0x1563   : > { %v2135_v63 = vpop.permute.xlu1 %2134 }
0x1564   : > { %2793 = vrsqrt.f32 %v1938_v41 }
0x1571   : > { %v2794_v36 = vpop.eup %2793 }
0x1572   : > { %v1942_v37 = vmul.f32 %v2794_v36, %v1926_v18 }
0x1574   : > { %v1948_v40 = vmul.f32 %v2359_v35, %v1942_v37 }
0x1576   : > { %v1954_v44 = vadd.f32 %v2360_v39, %v1948_v40 }
0x1578   : > { %v1955_v45 = vpack.c.bf16 %v1954_v44, %v1953_v42 }
0x157a   : > { %2601 = vmatmul.mubr.msk.bf16.vlgmr.msra.gmra.mxu1 %vm509_vm0, %v1955_v45 }
0x163a   : > { %v2013_v15 = vpop.f32.mrf.mxu1 }
0x163b   : > { %v2014_v54 = vadd.f32 %v2361_v52, %v2013_v15 }
0x163c   : > { %v2602_v53 = vpop.f32.mrf.mxu1 }
0x163d   : > { %v2020_v57 = vmax.f32 %v2014_v54, 0.0 }
0x163e   : > { %v2016_v55 = vpop.f32.mrf.mxu1 }
0x163f   : > { %v2017_v56 = vadd.f32 %v2361_v52, %v2016_v55 }
0x1640   : > { %v2603_v26 = vpop.f32.mrf.mxu1 }
0x1641   : > { %v2021_v58 = vmax.f32 %v2017_v56, 0.0 }
0x1643   : > { %v2022_v59 = vpack.c.bf16 %v2021_v58, %v2020_v57 }
0x1645   : > { %2621 = vmatmul.mubr.bf16.vlgmr.msra.gmra.mxu0 %v2022_v59 }
0x1705   : > { %v2125_v62 = vpop.f32.mrf.mxu0 }
0x1706   : > { %v2126_v1 = vadd.f32 %v2365_v61, %v2125_v62 }
0x1707   : > { %v2622_v2 = vpop.f32.mrf.mxu0 }
0x1708   : > { %v2142_v3 = vmul.f32 %v2135_v63, %v2126_v1 }
0x1709   : > { %v2128_v4 = vpop.f32.mrf.mxu0 }
0x170a   : > { %2144 = vst [vmem:[%s480_s25] sm:$0xff] %v2142_v3  ;;  %v2129_v6 = vadd.f32 %v2365_v61, %v2128_v4 }
0x170b   : > { %v2623_v7 = vpop.f32.mrf.mxu0 }
0x170c   : > { %v2143_v8 = vmul.f32 %v2140_v5, %v2129_v6 }
0x170e   : > { %2145 = vst [vmem:[%s480_s25 + $0x8] sm:$0xff] %v2143_v8 }
0x170f   : > { %2967 = shalt.err (!%p2964_p4)
}
0x1710   : > { %s2968_s6 = scalar_lea.hbm %s3600_s24, 256  ;;  %s2972_s8 = scalar_lea.hbm %s3653_s10, 512 }
0x1711   : > { %p2969_p12 = scmp.ne.s32.totalorder %s3600_s24, %s2968_s6  ;;  %p2973_p7 = scmp.lt.s32.totalorder %s3600_s24, %s3653_s10 }
0x1712   : > { %p2974_p8 = scmp.lt.s32.totalorder %s2972_s8, %s2968_s6 }
0x1713   : > { %p2970_p6 = pnand %p2969_p12, %p3683_p0 }
0x1714   : > { %p2975_p11 = por %p2974_p8, %p2973_p7 }
0x1715   : > { %p2971_p2 = pneg %p2970_p6 }
0x1717   : > { %p2976_p10 = pnand %p2975_p11, %p2971_p2 }
0x1719   : > { %2979 = shalt.err (!%p2976_p10)
}
0x171a   : > { %s3057_s23 = smov 128   ;;  %s3058_s22 = smov 8  }
0x171b   : > { %2646 = dma.vmem_to_hbm [thread:$0]  (%p3683_p0), %s3595_s17, 256, %s3600_s24, %s2147_s20, %s3057_s23, %s3057_s23, %s3058_s22  }
0x171c PF: > { %s2175_s28 = sand.u32 1, %s3018_s13   ;;  %p3684_p13 = scmp.ne.s32.totalorder %s3672_s30, 0 }
0x171d   : > { %p3685_p5 = scmp.ge.s32.totalorder %s3030_s16, 2  ;;  %s2176_s19 = scalar_lea.sflag [#allocation5], %s2175_s28 }
0x171f   : > { %p2669_p9 = pnand %p3685_p5, %p3684_p13 }
0x1721   : > { %p2670_p1 = pneg %p2669_p9 }
0x1723   : > { %3013 = dma.done.wait (%p2670_p1), %s2176_s19, 256  }
0x1724   : > { %3015 = vsyncadd (%p2670_p1), %s2176_s19, 4294967040  ;;  %p26_p3 = scmp.ge.s32.totalorder %s3222_s26, 4   ;;  %s3686_s13 = smov %s3022_s14 }
0x1725   : > { %s3687_s14 = smov %s3026_s15  ;;  %s3688_s15 = smov %s3234_s29 }
0x1726   : > { %s3689_s16 = smov %s3222_s26  ;;  %28 = sbr.rel (!%p26_p3) target bundleno = 13 (0xd), region = 134 }
0x172b   :  { %2181 = vsyncpa [#allocation4], 1 }
0x172c   :  { %2183 = vsyncpa [#allocation4 + $0x1], 1 }
0x172d   :  { %2184 = vsyncpa [#allocation7], 1 }
0x172e   :  { %2185 = vsyncpa [#allocation10], 1 }
0x172f   :  { %2186 = vsyncpa [#allocation13], 1 }
0x1730   :  { %2187 = vsyncpa [#allocation5], 1 }
0x1731   :  { %2189 = vsyncpa [#allocation5 + $0x1], 1 }

</bundles_post_ra>
